<compile_context>
chip_gen: v7x
topology: tpu7x:2x2x1
jax: 0.10.0
libtpu: 0.0.40
codegen_flags: <defaults>
</compile_context>

<pallas_src>
import functools

import jax
import jax.numpy as jnp
from jax.experimental import pallas as pl
from jax.experimental.pallas import tpu as pltpu

LN_EPS = 1e-6   # timm ViT LayerNorm eps
NEG_INF = -1e30


def _layernorm(x, g, b):
    mu = jnp.mean(x, axis=-1, keepdims=True)
    var = jnp.mean(jnp.square(x - mu), axis=-1, keepdims=True)
    return (x - mu) * jax.lax.rsqrt(var + LN_EPS) * g + b


# ----------------------------- fused Pallas kernel ----------------------------- #

def _fused_block_kernel(
        # --- inputs ---
        patches_ref, patch_w_ref, patch_b_ref, pos_ref,
        ln1g_ref, ln1b_ref, wq_ref, wk_ref, wv_ref, bq_ref, bk_ref, bv_ref,
        wproj_ref, bproj_ref, ls1_ref,
        ln2g_ref, ln2b_ref, wfc1_ref, bfc1_ref, wfc2_ref, bfc2_ref, ls2_ref,
        normg_ref, normb_ref, headw_ref, headb_ref,
        # --- outputs ---
        q_out_ref, sqerr_ref,
        # --- scratch ---
        x_scr,
        *, depth, num_heads, head_dim, bt, t_pad, t_valid):
    d = pl.program_id(1)
    D = pos_ref.shape[1]
    Mt = bt * t_pad

    # ---- patch embed + cls/pos injection: only at the first depth step of this tile ----
    @pl.when(d == 0)
    def _():
        tok = jnp.dot(patches_ref[...], patch_w_ref[...],
                      preferred_element_type=jnp.float32) + patch_b_ref[...]
        x0 = tok.reshape(bt, t_pad, D) + pos_ref[...]
        x_scr[...] = x0.reshape(Mt, D)

    x = x_scr[...]                                      # (Mt, D) f32 activation carry

    # additive key-padding bias (padded tokens never attended to); t_valid is static
    kidx = jax.lax.broadcasted_iota(jnp.int32, (1, 1, t_pad), 2)
    key_bias = jnp.where(kidx < t_valid, 0.0, NEG_INF)

    # --------------- attention branch (full-width bf16 QKV / proj matmuls) --------------
    xn = _layernorm(x, ln1g_ref[0], ln1b_ref[0]).astype(jnp.bfloat16)
    q = jnp.dot(xn, wq_ref[0], preferred_element_type=jnp.float32) + bq_ref[0]
    k = jnp.dot(xn, wk_ref[0], preferred_element_type=jnp.float32) + bk_ref[0]
    v = jnp.dot(xn, wv_ref[0], preferred_element_type=jnp.float32) + bv_ref[0]
    qb = q.reshape(bt, t_pad, D).astype(jnp.bfloat16)   # attention scale folded into wq/bq
    kb = k.reshape(bt, t_pad, D).astype(jnp.bfloat16)
    vb = v.reshape(bt, t_pad, D).astype(jnp.bfloat16)

    head_outs = []
    for h in range(num_heads):        # only the per-head score/PV einsums are unrolled
        sl = slice(h * head_dim, (h + 1) * head_dim)
        s = jnp.einsum('bqd,bkd->bqk', qb[:, :, sl], kb[:, :, sl],
                       preferred_element_type=jnp.float32)        # (bt, T, T) f32
        s = s + key_bias
        s = s - jnp.max(s, axis=-1, keepdims=True)
        p = jnp.exp(s)
        p = p * pl.reciprocal(jnp.sum(p, axis=-1, keepdims=True), approx=True)
        oh = jnp.einsum('bqk,bkd->bqd', p.astype(jnp.bfloat16), vb[:, :, sl],
                        preferred_element_type=jnp.float32)       # (bt, T, hd)
        head_outs.append(oh)
    o = jnp.concatenate(head_outs, axis=-1).reshape(Mt, D)
    attn = jnp.dot(o.astype(jnp.bfloat16), wproj_ref[0],
                   preferred_element_type=jnp.float32) + bproj_ref[0]
    x = x + ls1_ref[0] * attn

    # ----------------------------------- MLP branch -----------------------------------
    xn2 = _layernorm(x, ln2g_ref[0], ln2b_ref[0]).astype(jnp.bfloat16)
    h1 = jnp.dot(xn2, wfc1_ref[0], preferred_element_type=jnp.float32) + bfc1_ref[0]
    h1 = jax.nn.gelu(h1, approximate=True)
    h2 = jnp.dot(h1.astype(jnp.bfloat16), wfc2_ref[0],
                 preferred_element_type=jnp.float32) + bfc2_ref[0]
    x = x + ls2_ref[0] * h2

    x_scr[...] = x

    # ---- final LN (cls token) -> Linear head (lane-padded) -> binary VQ: last layer ----
    @pl.when(d == depth - 1)
    def _():
        x_cls = x.reshape(bt, t_pad, D)[:, 0, :]                       # (bt, D)
        xcn = _layernorm(x_cls, normg_ref[...], normb_ref[...]).astype(jnp.bfloat16)
        z = jnp.dot(xcn, headw_ref[...],
                    preferred_element_type=jnp.float32) + headb_ref[...]   # (bt, Fp)
        # VectorQuantize(dim=1, codebook=[[0.],[1.]]): nearest code, ties -> code 0
        qz = (z > 0.5).astype(jnp.float32)
        q_out_ref[...] = qz
        sqerr_ref[...] = jnp.square(qz - z)   # per-element commit error; mean in wrapper


# --------------------------------- JAX glue ---------------------------------- #

def extract_patches(x, patch):
    # x: NCHW -> (B, N, C*p*p)  (Conv2d with kernel == stride == patch, as im2col)
    B, C, Hh, Ww = x.shape
    Hp, Wp = Hh // patch, Ww // patch
    x = x.reshape(B, C, Hp, patch, Wp, patch)
    x = x.transpose(0, 2, 4, 1, 3, 5)                       # (B, Hp, Wp, C, p, p)
    return x.reshape(B, Hp * Wp, C * patch * patch)


def _vmem_limit_bytes():
    # generation-aware scoped-VMEM limit: ~64 MiB physical on v7x, 128 MiB on v5e/v6e
    try:
        cap = pltpu.get_tpu_info().vmem_capacity_bytes
    except Exception:
        cap = 64 * 1024 * 1024
    return int(min(0.75 * cap, 100 * 1024 * 1024))


def res_extr_forward(x_nchw, params, cfg, batch_tile=None):
    B = x_nchw.shape[0]
    patch, F = cfg['patch'], cfg['features']
    D, depth, Hn = cfg['embed_dim'], cfg['depth'], cfg['num_heads']
    hd = D // Hn
    Hm = params['wfc1'].shape[2]
    Fp = params['head_w'].shape[1]

    patches = extract_patches(x_nchw, patch)                 # (B, N, P)
    _, N, P = patches.shape
    T = N + 1
    T_pad = ((T + 7) // 8) * 8     # sublane-aligned token count; pad keys masked in-kernel

    if batch_tile is None:
        batch_tile = B             # one tile for small B; use multiples of 8 for big B
    assert B % batch_tile == 0
    assert batch_tile == B or batch_tile % 8 == 0   # output block sublane alignment
    n_bt = B // batch_tile
    Mt = batch_tile * T_pad

    # row 0 per image is a zero patch (cls slot); rows T..T_pad-1 are zero padding
    patches_full = jnp.zeros((B, T_pad, P), jnp.float32)
    patches_full = patches_full.at[:, 1:T, :].set(patches)
    patches_full = patches_full.reshape(B * T_pad, P).astype(jnp.bfloat16)

    # cls injected via pos_full[0] = cls_token - patch_b (zero patch row -> exact cls)
    pos_full = jnp.zeros((T_pad, D), jnp.float32)
    pos_full = pos_full.at[0:1, :].set(params['cls_token'] - params['patch_b'])
    pos_full = pos_full.at[1:T, :].set(params['pos_embed'])

    kernel = functools.partial(
        _fused_block_kernel, depth=depth, num_heads=Hn, head_dim=hd,
        bt=batch_tile, t_pad=T_pad, t_valid=T)

    lyr3 = lambda i, d: (d, 0, 0)      # per-layer weight blocks (pipelined over depth)
    cst2 = lambda i, d: (0, 0)         # shared (resident) tensors
    bat2 = lambda i, d: (i, 0)         # batch-tiled tensors

    in_specs = [
        pl.BlockSpec((Mt, P), bat2),            # patches (bf16)
        pl.BlockSpec((P, D), cst2),             # patch_w
        pl.BlockSpec((1, D), cst2),             # patch_b
        pl.BlockSpec((T_pad, D), cst2),         # pos_full
        pl.BlockSpec((1, 1, D), lyr3),          # ln1_g
        pl.BlockSpec((1, 1, D), lyr3),          # ln1_b
        pl.BlockSpec((1, D, D), lyr3),          # wq (scale folded)
        pl.BlockSpec((1, D, D), lyr3),          # wk
        pl.BlockSpec((1, D, D), lyr3),          # wv
        pl.BlockSpec((1, 1, D), lyr3),          # bq
        pl.BlockSpec((1, 1, D), lyr3),          # bk
        pl.BlockSpec((1, 1, D), lyr3),          # bv
        pl.BlockSpec((1, D, D), lyr3),          # wproj
        pl.BlockSpec((1, 1, D), lyr3),          # bproj
        pl.BlockSpec((1, 1, D), lyr3),          # ls1
        pl.BlockSpec((1, 1, D), lyr3),          # ln2_g
        pl.BlockSpec((1, 1, D), lyr3),          # ln2_b
        pl.BlockSpec((1, D, Hm), lyr3),         # wfc1
        pl.BlockSpec((1, 1, Hm), lyr3),         # bfc1
        pl.BlockSpec((1, Hm, D), lyr3),         # wfc2
        pl.BlockSpec((1, 1, D), lyr3),          # bfc2
        pl.BlockSpec((1, 1, D), lyr3),          # ls2
        pl.BlockSpec((1, D), cst2),             # norm_g
        pl.BlockSpec((1, D), cst2),             # norm_b
        pl.BlockSpec((D, Fp), cst2),            # head_w
        pl.BlockSpec((1, Fp), cst2),            # head_b
    ]
    out_specs = (pl.BlockSpec((batch_tile, Fp), bat2),
                 pl.BlockSpec((batch_tile, Fp), bat2))

    q_pad, sqerr_pad = pl.pallas_call(
        kernel,
        out_shape=(jax.ShapeDtypeStruct((B, Fp), jnp.float32),
                   jax.ShapeDtypeStruct((B, Fp), jnp.float32)),
        grid_spec=pltpu.PrefetchScalarGridSpec(
            num_scalar_prefetch=0,
            grid=(n_bt, depth),
            in_specs=in_specs,
            out_specs=out_specs,
            scratch_shapes=[pltpu.VMEM((Mt, D), jnp.float32)]),   # activation carry
        compiler_params=pltpu.CompilerParams(
            dimension_semantics=("parallel", "arbitrary"),
            vmem_limit_bytes=_vmem_limit_bytes()),
    )(patches_full, params['patch_w'], params['patch_b'], pos_full,
      params['ln1_g'], params['ln1_b'],
      params['wq'], params['wk'], params['wv'],
      params['bq'], params['bk'], params['bv'],
      params['wproj'], params['bproj'], params['ls1'],
      params['ln2_g'], params['ln2_b'],
      params['wfc1'], params['bfc1'], params['wfc2'], params['bfc2'],
      params['ls2'],
      params['norm_g'], params['norm_b'],
      params['head_w'], params['head_b'])

    quantize = q_pad[:, :F]
    # commitment loss = mse(quantize.detach(), z), commitment_weight = 1.0
    commit_loss = jnp.mean(sqerr_pad[:, :F])
    return quantize, commit_loss


def init_params(key, cfg):
    C, patch, D = cfg['in_chans'], cfg['patch'], cfg['embed_dim']
    Hm = int(cfg['mlp_ratio'] * D)
    depth, Hn = cfg['depth'], cfg['num_heads']
    hd = D // Hn
    N, F = cfg['num_patches'], cfg['features']
    Fp = max(128, ((F + 127) // 128) * 128)   # lane-dense head output width
    P = C * patch * patch
    keys = iter(jax.random.split(key, 64))

    def w(shape, s=0.02):
        return s * jax.random.normal(next(keys), shape, jnp.float32)

    def wb(shape, s=0.02):      # bf16 matmul weights (f32 accumulation in-kernel)
        return w(shape, s).astype(jnp.bfloat16)

    attn_scale = hd ** -0.5
    params = dict(
        patch_w=wb((P, D)),
        patch_b=jnp.zeros((1, D), jnp.float32),
        pos_embed=w((N, D)),
        cls_token=w((1, D)),
        ln1_g=jnp.ones((depth, 1, D), jnp.float32),
        ln1_b=jnp.zeros((depth, 1, D), jnp.float32),
        # full-width QKV / proj weights; attention scale folded into wq (and bq) at init
        wq=(w((depth, D, D)) * attn_scale).astype(jnp.bfloat16),
        wk=wb((depth, D, D)),
        wv=wb((depth, D, D)),
        bq=jnp.zeros((depth, 1, D), jnp.float32),   # (would also carry the scale if nonzero)
        bk=jnp.zeros((depth, 1, D), jnp.float32),
        bv=jnp.zeros((depth, 1, D), jnp.float32),
        wproj=wb((depth, D, D)),
        bproj=jnp.zeros((depth, 1, D), jnp.float32),
        ls1=jnp.full((depth, 1, D), 0.1, jnp.float32),
        ln2_g=jnp.ones((depth, 1, D), jnp.float32),
        ln2_b=jnp.zeros((depth, 1, D), jnp.float32),
        wfc1=wb((depth, D, Hm)),
        bfc1=jnp.zeros((depth, 1, Hm), jnp.float32),
        wfc2=wb((depth, Hm, D)),
        bfc2=jnp.zeros((depth, 1, D), jnp.float32),
        ls2=jnp.full((depth, 1, D), 0.1, jnp.float32),
        norm_g=jnp.ones((1, D), jnp.float32),
        norm_b=jnp.zeros((1, D), jnp.float32),
        # head padded to Fp lanes with zero columns (padded lanes give code 0, zero loss)
        head_w=jnp.zeros((D, Fp), jnp.bfloat16).at[:, :F].set(wb((D, F))),
        head_b=jnp.zeros((1, Fp), jnp.float32).at[:, :F].set(
            jax.random.uniform(next(keys), (1, F), jnp.float32)),  # mix of 0/1 codes
    )
    return params


if __name__ == "__main__":
    cfg = dict(in_chans=3, patch=8, embed_dim=64, depth=2, num_heads=4,
               mlp_ratio=4, features=16)
    B, H, W = 2, 16, 16
    cfg['num_patches'] = (H // cfg['patch']) * (W // cfg['patch'])

    key = jax.random.PRNGKey(0)
    kp, kx = jax.random.split(key)
    params = init_params(kp, cfg)
    x = jax.random.normal(kx, (B, cfg['in_chans'], H, W), jnp.float32)

    quantize, commit_loss = res_extr_forward(x, params, cfg)
    jax.block_until_ready((quantize, commit_loss))

    assert quantize.shape == (B, cfg['features'])
    assert bool(jnp.all((quantize == 0.0) | (quantize == 1.0)))
    assert bool(jnp.isfinite(commit_loss))
    print("KERNEL_OK")
</pallas_src>

<mosaic_0001>
module attributes {stable_mosaic.version = 11 : i64} {
  func.func @_fused_block_kernel(%arg0: i32, %arg1: i32, %arg2: memref<16x192xbf16, #tpu.memory_space<vmem>>, %arg3: memref<192x64xbf16, #tpu.memory_space<vmem>>, %arg4: memref<1x64xf32, #tpu.memory_space<vmem>>, %arg5: memref<8x64xf32, #tpu.memory_space<vmem>>, %arg6: memref<1x1x64xf32, #tpu.memory_space<vmem>>, %arg7: memref<1x1x64xf32, #tpu.memory_space<vmem>>, %arg8: memref<1x64x64xbf16, #tpu.memory_space<vmem>>, %arg9: memref<1x64x64xbf16, #tpu.memory_space<vmem>>, %arg10: memref<1x64x64xbf16, #tpu.memory_space<vmem>>, %arg11: memref<1x1x64xf32, #tpu.memory_space<vmem>>, %arg12: memref<1x1x64xf32, #tpu.memory_space<vmem>>, %arg13: memref<1x1x64xf32, #tpu.memory_space<vmem>>, %arg14: memref<1x64x64xbf16, #tpu.memory_space<vmem>>, %arg15: memref<1x1x64xf32, #tpu.memory_space<vmem>>, %arg16: memref<1x1x64xf32, #tpu.memory_space<vmem>>, %arg17: memref<1x1x64xf32, #tpu.memory_space<vmem>>, %arg18: memref<1x1x64xf32, #tpu.memory_space<vmem>>, %arg19: memref<1x64x256xbf16, #tpu.memory_space<vmem>>, %arg20: memref<1x1x256xf32, #tpu.memory_space<vmem>>, %arg21: memref<1x256x64xbf16, #tpu.memory_space<vmem>>, %arg22: memref<1x1x64xf32, #tpu.memory_space<vmem>>, %arg23: memref<1x1x64xf32, #tpu.memory_space<vmem>>, %arg24: memref<1x64xf32, #tpu.memory_space<vmem>>, %arg25: memref<1x64xf32, #tpu.memory_space<vmem>>, %arg26: memref<64x128xbf16, #tpu.memory_space<vmem>>, %arg27: memref<1x128xf32, #tpu.memory_space<vmem>>, %arg28: memref<2x128xf32, #tpu.memory_space<vmem>>, %arg29: memref<2x128xf32, #tpu.memory_space<vmem>>, %arg30: memref<16x64xf32, #tpu.memory_space<vmem>>) attributes {dimension_semantics = [#tpu.dimension_semantics<parallel>, #tpu.dimension_semantics<arbitrary>], iteration_bounds = array<i64: 1, 2>, scalar_prefetch = 0 : i64, scratch_operands = 1 : i64, tpu.core_type = #tpu.core_type<tc>, window_params = [{transform_indices = @transform_0, window_bounds = array<i64: 16, 192>}, {pipeline_mode = #tpu.pipeline_mode<synchronous>, transform_indices = @transform_1, window_bounds = array<i64: 192, 64>}, {pipeline_mode = #tpu.pipeline_mode<synchronous>, transform_indices = @transform_2, window_bounds = array<i64: 1, 64>}, {pipeline_mode = #tpu.pipeline_mode<synchronous>, transform_indices = @transform_3, window_bounds = array<i64: 8, 64>}, {transform_indices = @transform_4, window_bounds = array<i64: 1, 1, 64>}, {transform_indices = @transform_5, window_bounds = array<i64: 1, 1, 64>}, {transform_indices = @transform_6, window_bounds = array<i64: 1, 64, 64>}, {transform_indices = @transform_7, window_bounds = array<i64: 1, 64, 64>}, {transform_indices = @transform_8, window_bounds = array<i64: 1, 64, 64>}, {transform_indices = @transform_9, window_bounds = array<i64: 1, 1, 64>}, {transform_indices = @transform_10, window_bounds = array<i64: 1, 1, 64>}, {transform_indices = @transform_11, window_bounds = array<i64: 1, 1, 64>}, {transform_indices = @transform_12, window_bounds = array<i64: 1, 64, 64>}, {transform_indices = @transform_13, window_bounds = array<i64: 1, 1, 64>}, {transform_indices = @transform_14, window_bounds = array<i64: 1, 1, 64>}, {transform_indices = @transform_15, window_bounds = array<i64: 1, 1, 64>}, {transform_indices = @transform_16, window_bounds = array<i64: 1, 1, 64>}, {transform_indices = @transform_17, window_bounds = array<i64: 1, 64, 256>}, {transform_indices = @transform_18, window_bounds = array<i64: 1, 1, 256>}, {transform_indices = @transform_19, window_bounds = array<i64: 1, 256, 64>}, {transform_indices = @transform_20, window_bounds = array<i64: 1, 1, 64>}, {transform_indices = @transform_21, window_bounds = array<i64: 1, 1, 64>}, {pipeline_mode = #tpu.pipeline_mode<synchronous>, transform_indices = @transform_22, window_bounds = array<i64: 1, 64>}, {pipeline_mode = #tpu.pipeline_mode<synchronous>, transform_indices = @transform_23, window_bounds = array<i64: 1, 64>}, {pipeline_mode = #tpu.pipeline_mode<synchronous>, transform_indices = @transform_24, window_bounds = array<i64: 64, 128>}, {pipeline_mode = #tpu.pipeline_mode<synchronous>, transform_indices = @transform_25, window_bounds = array<i64: 1, 128>}, {transform_indices = @transform_26, window_bounds = array<i64: 2, 128>}, {transform_indices = @transform_27, window_bounds = array<i64: 2, 128>}]} {
    %c0_i32 = arith.constant 0 : i32
    %0 = arith.cmpi eq, %arg1, %c0_i32 : i32
    %1 = arith.extui %0 : i1 to i32
    %c0_i32_0 = arith.constant 0 : i32
    %2 = arith.cmpi ne, %1, %c0_i32_0 : i32
    scf.if %2 {
      %c0_96 = arith.constant 0 : index
      %c0_97 = arith.constant 0 : index
      %215 = vector.load %arg2[%c0_96, %c0_97] : memref<16x192xbf16, #tpu.memory_space<vmem>>, vector<16x192xbf16>
      %c0_98 = arith.constant 0 : index
      %c0_99 = arith.constant 0 : index
      %216 = vector.load %arg3[%c0_98, %c0_99] : memref<192x64xbf16, #tpu.memory_space<vmem>>, vector<192x64xbf16>
      %cst_100 = arith.constant dense<0.000000e+00> : vector<16x64xf32>
      %217 = tpu.matmul %215, %216, %cst_100 {dimension_numbers = #tpu.dot_dimension_numbers<[1], [0], [0], [1], [0, 0, 1, 1], [], []>} : vector<16x192xbf16>, vector<192x64xbf16>, vector<16x64xf32> -> vector<16x64xf32>
      %c0_101 = arith.constant 0 : index
      %c0_102 = arith.constant 0 : index
      %218 = vector.load %arg4[%c0_101, %c0_102] : memref<1x64xf32, #tpu.memory_space<vmem>>, vector<1x64xf32>
      %219 = vector.broadcast %218 : vector<1x64xf32> to vector<16x64xf32>
      %220 = arith.addf %217, %219 : vector<16x64xf32>
      %221 = vector.shape_cast %220 : vector<16x64xf32> to vector<2x8x64xf32>
      %c0_103 = arith.constant 0 : index
      %c0_104 = arith.constant 0 : index
      %222 = vector.load %arg5[%c0_103, %c0_104] : memref<8x64xf32, #tpu.memory_space<vmem>>, vector<8x64xf32>
      %223 = vector.shape_cast %222 : vector<8x64xf32> to vector<1x8x64xf32>
      %224 = vector.broadcast %223 : vector<1x8x64xf32> to vector<2x8x64xf32>
      %225 = arith.addf %221, %224 : vector<2x8x64xf32>
      %226 = vector.shape_cast %225 : vector<2x8x64xf32> to vector<16x64xf32>
      %c0_105 = arith.constant 0 : index
      %c0_106 = arith.constant 0 : index
      %227 = vector.load %arg30[%c0_105, %c0_106] : memref<16x64xf32, #tpu.memory_space<vmem>>, vector<16x64xf32>
      tpu.vector_store %arg30[%c0_105, %c0_106], %226 {strides = array<i32>} : memref<16x64xf32, #tpu.memory_space<vmem>>, vector<16x64xf32>,
    } else {
    }
    %c0 = arith.constant 0 : index
    %c0_1 = arith.constant 0 : index
    %3 = vector.load %arg30[%c0, %c0_1] : memref<16x64xf32, #tpu.memory_space<vmem>>, vector<16x64xf32>
    %4 = tpu.iota {dimensions = array<i32: 2>} : vector<1x1x8xi32>
    %c5_i32 = arith.constant 5 : i32
    %5 = vector.broadcast %c5_i32 : i32 to vector<1x1x8xi32>
    %6 = arith.cmpi slt, %4, %5 : vector<1x1x8xi32>
    %cst = arith.constant 0.000000e+00 : f32
    %cst_2 = arith.constant -1.000000e+30 : f32
    %7 = vector.broadcast %cst : f32 to vector<1x1x8xf32>
    %8 = vector.broadcast %cst_2 : f32 to vector<1x1x8xf32>
    %9 = arith.select %6, %7, %8 : vector<1x1x8xi1>, vector<1x1x8xf32>
    %c0_3 = arith.constant 0 : index
    %c0_4 = arith.constant 0 : index
    %c0_5 = arith.constant 0 : index
    %10 = vector.load %arg6[%c0_3, %c0_4, %c0_5] : memref<1x1x64xf32, #tpu.memory_space<vmem>>, vector<1x1x64xf32>
    %11 = vector.shape_cast %10 : vector<1x1x64xf32> to vector<1x64xf32>
    %c0_6 = arith.constant 0 : index
    %c0_7 = arith.constant 0 : index
    %c0_8 = arith.constant 0 : index
    %12 = vector.load %arg7[%c0_6, %c0_7, %c0_8] : memref<1x1x64xf32, #tpu.memory_space<vmem>>, vector<1x1x64xf32>
    %13 = vector.shape_cast %12 : vector<1x1x64xf32> to vector<1x64xf32>
    %cst_9 = arith.constant dense<0.000000e+00> : vector<16xf32>
    %14 = vector.multi_reduction <add>, %3, %cst_9 [1] : vector<16x64xf32> to vector<16xf32>
    %15 = vector.shape_cast %14 : vector<16xf32> to vector<16x1xf32>
    %cst_10 = arith.constant 6.400000e+01 : f32
    %16 = vector.broadcast %cst_10 : f32 to vector<16x1xf32>
    %17 = arith.divf %15, %16 : vector<16x1xf32>
    %18 = vector.broadcast %17 : vector<16x1xf32> to vector<16x64xf32>
    %19 = arith.subf %3, %18 : vector<16x64xf32>
    %20 = arith.mulf %19, %19 : vector<16x64xf32>
    %cst_11 = arith.constant dense<0.000000e+00> : vector<16xf32>
    %21 = vector.multi_reduction <add>, %20, %cst_11 [1] : vector<16x64xf32> to vector<16xf32>
    %22 = vector.shape_cast %21 : vector<16xf32> to vector<16x1xf32>
    %cst_12 = arith.constant 6.400000e+01 : f32
    %23 = vector.broadcast %cst_12 : f32 to vector<16x1xf32>
    %24 = arith.divf %22, %23 : vector<16x1xf32>
    %25 = vector.broadcast %17 : vector<16x1xf32> to vector<16x64xf32>
    %26 = arith.subf %3, %25 : vector<16x64xf32>
    %cst_13 = arith.constant 9.99999997E-7 : f32
    %27 = vector.broadcast %cst_13 : f32 to vector<16x1xf32>
    %28 = arith.addf %24, %27 : vector<16x1xf32>
    %29 = math.rsqrt %28 : vector<16x1xf32>
    %30 = vector.broadcast %29 : vector<16x1xf32> to vector<16x64xf32>
    %31 = arith.mulf %26, %30 : vector<16x64xf32>
    %32 = vector.broadcast %11 : vector<1x64xf32> to vector<16x64xf32>
    %33 = arith.mulf %31, %32 : vector<16x64xf32>
    %34 = vector.broadcast %13 : vector<1x64xf32> to vector<16x64xf32>
    %35 = arith.addf %33, %34 : vector<16x64xf32>
    %36 = arith.truncf %35 : vector<16x64xf32> to vector<16x64xbf16>
    %c0_14 = arith.constant 0 : index
    %c0_15 = arith.constant 0 : index
    %c0_16 = arith.constant 0 : index
    %37 = vector.load %arg8[%c0_14, %c0_15, %c0_16] : memref<1x64x64xbf16, #tpu.memory_space<vmem>>, vector<1x64x64xbf16>
    %38 = vector.shape_cast %37 : vector<1x64x64xbf16> to vector<64x64xbf16>
    %cst_17 = arith.constant dense<0.000000e+00> : vector<16x64xf32>
    %39 = tpu.matmul %36, %38, %cst_17 {dimension_numbers = #tpu.dot_dimension_numbers<[1], [0], [0], [1], [0, 0, 1, 1], [], []>} : vector<16x64xbf16>, vector<64x64xbf16>, vector<16x64xf32> -> vector<16x64xf32>
    %c0_18 = arith.constant 0 : index
    %c0_19 = arith.constant 0 : index
    %c0_20 = arith.constant 0 : index
    %40 = vector.load %arg11[%c0_18, %c0_19, %c0_20] : memref<1x1x64xf32, #tpu.memory_space<vmem>>, vector<1x1x64xf32>
    %41 = vector.shape_cast %40 : vector<1x1x64xf32> to vector<1x64xf32>
    %42 = vector.broadcast %41 : vector<1x64xf32> to vector<16x64xf32>
    %43 = arith.addf %39, %42 : vector<16x64xf32>
    %c0_21 = arith.constant 0 : index
    %c0_22 = arith.constant 0 : index
    %c0_23 = arith.constant 0 : index
    %44 = vector.load %arg9[%c0_21, %c0_22, %c0_23] : memref<1x64x64xbf16, #tpu.memory_space<vmem>>, vector<1x64x64xbf16>
    %45 = vector.shape_cast %44 : vector<1x64x64xbf16> to vector<64x64xbf16>
    %cst_24 = arith.constant dense<0.000000e+00> : vector<16x64xf32>
    %46 = tpu.matmul %36, %45, %cst_24 {dimension_numbers = #tpu.dot_dimension_numbers<[1], [0], [0], [1], [0, 0, 1, 1], [], []>} : vector<16x64xbf16>, vector<64x64xbf16>, vector<16x64xf32> -> vector<16x64xf32>
    %c0_25 = arith.constant 0 : index
    %c0_26 = arith.constant 0 : index
    %c0_27 = arith.constant 0 : index
    %47 = vector.load %arg12[%c0_25, %c0_26, %c0_27] : memref<1x1x64xf32, #tpu.memory_space<vmem>>, vector<1x1x64xf32>
    %48 = vector.shape_cast %47 : vector<1x1x64xf32> to vector<1x64xf32>
    %49 = vector.broadcast %48 : vector<1x64xf32> to vector<16x64xf32>
    %50 = arith.addf %46, %49 : vector<16x64xf32>
    %c0_28 = arith.constant 0 : index
    %c0_29 = arith.constant 0 : index
    %c0_30 = arith.constant 0 : index
    %51 = vector.load %arg10[%c0_28, %c0_29, %c0_30] : memref<1x64x64xbf16, #tpu.memory_space<vmem>>, vector<1x64x64xbf16>
    %52 = vector.shape_cast %51 : vector<1x64x64xbf16> to vector<64x64xbf16>
    %cst_31 = arith.constant dense<0.000000e+00> : vector<16x64xf32>
    %53 = tpu.matmul %36, %52, %cst_31 {dimension_numbers = #tpu.dot_dimension_numbers<[1], [0], [0], [1], [0, 0, 1, 1], [], []>} : vector<16x64xbf16>, vector<64x64xbf16>, vector<16x64xf32> -> vector<16x64xf32>
    %c0_32 = arith.constant 0 : index
    %c0_33 = arith.constant 0 : index
    %c0_34 = arith.constant 0 : index
    %54 = vector.load %arg13[%c0_32, %c0_33, %c0_34] : memref<1x1x64xf32, #tpu.memory_space<vmem>>, vector<1x1x64xf32>
    %55 = vector.shape_cast %54 : vector<1x1x64xf32> to vector<1x64xf32>
    %56 = vector.broadcast %55 : vector<1x64xf32> to vector<16x64xf32>
    %57 = arith.addf %53, %56 : vector<16x64xf32>
    %58 = vector.shape_cast %43 : vector<16x64xf32> to vector<2x8x64xf32>
    %59 = arith.truncf %58 : vector<2x8x64xf32> to vector<2x8x64xbf16>
    %60 = vector.shape_cast %50 : vector<16x64xf32> to vector<2x8x64xf32>
    %61 = arith.truncf %60 : vector<2x8x64xf32> to vector<2x8x64xbf16>
    %62 = vector.shape_cast %57 : vector<16x64xf32> to vector<2x8x64xf32>
    %63 = arith.truncf %62 : vector<2x8x64xf32> to vector<2x8x64xbf16>
    %64 = vector.extract_strided_slice %59 {offsets = [0, 0, 0], sizes = [2, 8, 16], strides = [1, 1, 1]} : vector<2x8x64xbf16> to vector<2x8x16xbf16>
    %65 = vector.extract_strided_slice %61 {offsets = [0, 0, 0], sizes = [2, 8, 16], strides = [1, 1, 1]} : vector<2x8x64xbf16> to vector<2x8x16xbf16>
    "tpu.trace_start"() <{level = 10 : i32, message = "bqd,bkd->bqk"}> : () -> ()
    %cst_35 = arith.constant dense<0.000000e+00> : vector<2x8x8xf32>
    %66 = tpu.matmul %64, %65, %cst_35 {dimension_numbers = #tpu.dot_dimension_numbers<[2], [2], [1], [1], [0, 0, 0, 1, 1, 1], [0], [0]>} : vector<2x8x16xbf16>, vector<2x8x16xbf16>, vector<2x8x8xf32> -> vector<2x8x8xf32>
    "tpu.trace_stop"() : () -> ()
    %67 = vector.broadcast %9 : vector<1x1x8xf32> to vector<2x8x8xf32>
    %68 = arith.addf %66, %67 : vector<2x8x8xf32>
    %cst_36 = arith.constant dense<0xFF800000> : vector<2x8xf32>
    %69 = vector.multi_reduction <maximumf>, %68, %cst_36 [2] : vector<2x8x8xf32> to vector<2x8xf32>
    %70 = vector.shape_cast %69 : vector<2x8xf32> to vector<2x8x1xf32>
    %71 = vector.broadcast %70 : vector<2x8x1xf32> to vector<2x8x8xf32>
    %72 = arith.subf %68, %71 : vector<2x8x8xf32>
    %73 = math.exp %72 : vector<2x8x8xf32>
    %cst_37 = arith.constant dense<0.000000e+00> : vector<2x8xf32>
    %74 = vector.multi_reduction <add>, %73, %cst_37 [2] : vector<2x8x8xf32> to vector<2x8xf32>
    %75 = vector.shape_cast %74 : vector<2x8xf32> to vector<2x8x1xf32>
    %76 = tpu.reciprocal %75 {approx = true} : vector<2x8x1xf32> -> vector<2x8x1xf32>
    %77 = vector.broadcast %76 : vector<2x8x1xf32> to vector<2x8x8xf32>
    %78 = arith.mulf %73, %77 : vector<2x8x8xf32>
    %79 = arith.truncf %78 : vector<2x8x8xf32> to vector<2x8x8xbf16>
    %80 = vector.extract_strided_slice %63 {offsets = [0, 0, 0], sizes = [2, 8, 16], strides = [1, 1, 1]} : vector<2x8x64xbf16> to vector<2x8x16xbf16>
    "tpu.trace_start"() <{level = 10 : i32, message = "bqk,bkd->bqd"}> : () -> ()
    %cst_38 = arith.constant dense<0.000000e+00> : vector<2x8x16xf32>
    %81 = tpu.matmul %79, %80, %cst_38 {dimension_numbers = #tpu.dot_dimension_numbers<[2], [1], [1], [2], [0, 0, 0, 1, 1, 2], [0], [0]>} : vector<2x8x8xbf16>, vector<2x8x16xbf16>, vector<2x8x16xf32> -> vector<2x8x16xf32>
    "tpu.trace_stop"() : () -> ()
    %82 = vector.extract_strided_slice %59 {offsets = [0, 0, 16], sizes = [2, 8, 16], strides = [1, 1, 1]} : vector<2x8x64xbf16> to vector<2x8x16xbf16>
    %83 = vector.extract_strided_slice %61 {offsets = [0, 0, 16], sizes = [2, 8, 16], strides = [1, 1, 1]} : vector<2x8x64xbf16> to vector<2x8x16xbf16>
    "tpu.trace_start"() <{level = 10 : i32, message = "bqd,bkd->bqk"}> : () -> ()
    %cst_39 = arith.constant dense<0.000000e+00> : vector<2x8x8xf32>
    %84 = tpu.matmul %82, %83, %cst_39 {dimension_numbers = #tpu.dot_dimension_numbers<[2], [2], [1], [1], [0, 0, 0, 1, 1, 1], [0], [0]>} : vector<2x8x16xbf16>, vector<2x8x16xbf16>, vector<2x8x8xf32> -> vector<2x8x8xf32>
    "tpu.trace_stop"() : () -> ()
    %85 = vector.broadcast %9 : vector<1x1x8xf32> to vector<2x8x8xf32>
    %86 = arith.addf %84, %85 : vector<2x8x8xf32>
    %cst_40 = arith.constant dense<0xFF800000> : vector<2x8xf32>
    %87 = vector.multi_reduction <maximumf>, %86, %cst_40 [2] : vector<2x8x8xf32> to vector<2x8xf32>
    %88 = vector.shape_cast %87 : vector<2x8xf32> to vector<2x8x1xf32>
    %89 = vector.broadcast %88 : vector<2x8x1xf32> to vector<2x8x8xf32>
    %90 = arith.subf %86, %89 : vector<2x8x8xf32>
    %91 = math.exp %90 : vector<2x8x8xf32>
    %cst_41 = arith.constant dense<0.000000e+00> : vector<2x8xf32>
    %92 = vector.multi_reduction <add>, %91, %cst_41 [2] : vector<2x8x8xf32> to vector<2x8xf32>
    %93 = vector.shape_cast %92 : vector<2x8xf32> to vector<2x8x1xf32>
    %94 = tpu.reciprocal %93 {approx = true} : vector<2x8x1xf32> -> vector<2x8x1xf32>
    %95 = vector.broadcast %94 : vector<2x8x1xf32> to vector<2x8x8xf32>
    %96 = arith.mulf %91, %95 : vector<2x8x8xf32>
    %97 = arith.truncf %96 : vector<2x8x8xf32> to vector<2x8x8xbf16>
    %98 = vector.extract_strided_slice %63 {offsets = [0, 0, 16], sizes = [2, 8, 16], strides = [1, 1, 1]} : vector<2x8x64xbf16> to vector<2x8x16xbf16>
    "tpu.trace_start"() <{level = 10 : i32, message = "bqk,bkd->bqd"}> : () -> ()
    %cst_42 = arith.constant dense<0.000000e+00> : vector<2x8x16xf32>
    %99 = tpu.matmul %97, %98, %cst_42 {dimension_numbers = #tpu.dot_dimension_numbers<[2], [1], [1], [2], [0, 0, 0, 1, 1, 2], [0], [0]>} : vector<2x8x8xbf16>, vector<2x8x16xbf16>, vector<2x8x16xf32> -> vector<2x8x16xf32>
    "tpu.trace_stop"() : () -> ()
    %100 = vector.extract_strided_slice %59 {offsets = [0, 0, 32], sizes = [2, 8, 16], strides = [1, 1, 1]} : vector<2x8x64xbf16> to vector<2x8x16xbf16>
    %101 = vector.extract_strided_slice %61 {offsets = [0, 0, 32], sizes = [2, 8, 16], strides = [1, 1, 1]} : vector<2x8x64xbf16> to vector<2x8x16xbf16>
    "tpu.trace_start"() <{level = 10 : i32, message = "bqd,bkd->bqk"}> : () -> ()
    %cst_43 = arith.constant dense<0.000000e+00> : vector<2x8x8xf32>
    %102 = tpu.matmul %100, %101, %cst_43 {dimension_numbers = #tpu.dot_dimension_numbers<[2], [2], [1], [1], [0, 0, 0, 1, 1, 1], [0], [0]>} : vector<2x8x16xbf16>, vector<2x8x16xbf16>, vector<2x8x8xf32> -> vector<2x8x8xf32>
    "tpu.trace_stop"() : () -> ()
    %103 = vector.broadcast %9 : vector<1x1x8xf32> to vector<2x8x8xf32>
    %104 = arith.addf %102, %103 : vector<2x8x8xf32>
    %cst_44 = arith.constant dense<0xFF800000> : vector<2x8xf32>
    %105 = vector.multi_reduction <maximumf>, %104, %cst_44 [2] : vector<2x8x8xf32> to vector<2x8xf32>
    %106 = vector.shape_cast %105 : vector<2x8xf32> to vector<2x8x1xf32>
    %107 = vector.broadcast %106 : vector<2x8x1xf32> to vector<2x8x8xf32>
    %108 = arith.subf %104, %107 : vector<2x8x8xf32>
    %109 = math.exp %108 : vector<2x8x8xf32>
    %cst_45 = arith.constant dense<0.000000e+00> : vector<2x8xf32>
    %110 = vector.multi_reduction <add>, %109, %cst_45 [2] : vector<2x8x8xf32> to vector<2x8xf32>
    %111 = vector.shape_cast %110 : vector<2x8xf32> to vector<2x8x1xf32>
    %112 = tpu.reciprocal %111 {approx = true} : vector<2x8x1xf32> -> vector<2x8x1xf32>
    %113 = vector.broadcast %112 : vector<2x8x1xf32> to vector<2x8x8xf32>
    %114 = arith.mulf %109, %113 : vector<2x8x8xf32>
    %115 = arith.truncf %114 : vector<2x8x8xf32> to vector<2x8x8xbf16>
    %116 = vector.extract_strided_slice %63 {offsets = [0, 0, 32], sizes = [2, 8, 16], strides = [1, 1, 1]} : vector<2x8x64xbf16> to vector<2x8x16xbf16>
    "tpu.trace_start"() <{level = 10 : i32, message = "bqk,bkd->bqd"}> : () -> ()
    %cst_46 = arith.constant dense<0.000000e+00> : vector<2x8x16xf32>
    %117 = tpu.matmul %115, %116, %cst_46 {dimension_numbers = #tpu.dot_dimension_numbers<[2], [1], [1], [2], [0, 0, 0, 1, 1, 2], [0], [0]>} : vector<2x8x8xbf16>, vector<2x8x16xbf16>, vector<2x8x16xf32> -> vector<2x8x16xf32>
    "tpu.trace_stop"() : () -> ()
    %118 = vector.extract_strided_slice %59 {offsets = [0, 0, 48], sizes = [2, 8, 16], strides = [1, 1, 1]} : vector<2x8x64xbf16> to vector<2x8x16xbf16>
    %119 = vector.extract_strided_slice %61 {offsets = [0, 0, 48], sizes = [2, 8, 16], strides = [1, 1, 1]} : vector<2x8x64xbf16> to vector<2x8x16xbf16>
    "tpu.trace_start"() <{level = 10 : i32, message = "bqd,bkd->bqk"}> : () -> ()
    %cst_47 = arith.constant dense<0.000000e+00> : vector<2x8x8xf32>
    %120 = tpu.matmul %118, %119, %cst_47 {dimension_numbers = #tpu.dot_dimension_numbers<[2], [2], [1], [1], [0, 0, 0, 1, 1, 1], [0], [0]>} : vector<2x8x16xbf16>, vector<2x8x16xbf16>, vector<2x8x8xf32> -> vector<2x8x8xf32>
    "tpu.trace_stop"() : () -> ()
    %121 = vector.broadcast %9 : vector<1x1x8xf32> to vector<2x8x8xf32>
    %122 = arith.addf %120, %121 : vector<2x8x8xf32>
    %cst_48 = arith.constant dense<0xFF800000> : vector<2x8xf32>
    %123 = vector.multi_reduction <maximumf>, %122, %cst_48 [2] : vector<2x8x8xf32> to vector<2x8xf32>
    %124 = vector.shape_cast %123 : vector<2x8xf32> to vector<2x8x1xf32>
    %125 = vector.broadcast %124 : vector<2x8x1xf32> to vector<2x8x8xf32>
    %126 = arith.subf %122, %125 : vector<2x8x8xf32>
    %127 = math.exp %126 : vector<2x8x8xf32>
    %cst_49 = arith.constant dense<0.000000e+00> : vector<2x8xf32>
    %128 = vector.multi_reduction <add>, %127, %cst_49 [2] : vector<2x8x8xf32> to vector<2x8xf32>
    %129 = vector.shape_cast %128 : vector<2x8xf32> to vector<2x8x1xf32>
    %130 = tpu.reciprocal %129 {approx = true} : vector<2x8x1xf32> -> vector<2x8x1xf32>
    %131 = vector.broadcast %130 : vector<2x8x1xf32> to vector<2x8x8xf32>
    %132 = arith.mulf %127, %131 : vector<2x8x8xf32>
    %133 = arith.truncf %132 : vector<2x8x8xf32> to vector<2x8x8xbf16>
    %134 = vector.extract_strided_slice %63 {offsets = [0, 0, 48], sizes = [2, 8, 16], strides = [1, 1, 1]} : vector<2x8x64xbf16> to vector<2x8x16xbf16>
    "tpu.trace_start"() <{level = 10 : i32, message = "bqk,bkd->bqd"}> : () -> ()
    %cst_50 = arith.constant dense<0.000000e+00> : vector<2x8x16xf32>
    %135 = tpu.matmul %133, %134, %cst_50 {dimension_numbers = #tpu.dot_dimension_numbers<[2], [1], [1], [2], [0, 0, 0, 1, 1, 2], [0], [0]>} : vector<2x8x8xbf16>, vector<2x8x16xbf16>, vector<2x8x16xf32> -> vector<2x8x16xf32>
    "tpu.trace_stop"() : () -> ()
    %136 = tpu.concatenate %81, %99, %117, %135 in 2 : vector<2x8x16xf32>, vector<2x8x16xf32>, vector<2x8x16xf32>, vector<2x8x16xf32> -> vector<2x8x64xf32>
    %137 = vector.shape_cast %136 : vector<2x8x64xf32> to vector<16x64xf32>
    %138 = arith.truncf %137 : vector<16x64xf32> to vector<16x64xbf16>
    %c0_51 = arith.constant 0 : index
    %c0_52 = arith.constant 0 : index
    %c0_53 = arith.constant 0 : index
    %139 = vector.load %arg14[%c0_51, %c0_52, %c0_53] : memref<1x64x64xbf16, #tpu.memory_space<vmem>>, vector<1x64x64xbf16>
    %140 = vector.shape_cast %139 : vector<1x64x64xbf16> to vector<64x64xbf16>
    %cst_54 = arith.constant dense<0.000000e+00> : vector<16x64xf32>
    %141 = tpu.matmul %138, %140, %cst_54 {dimension_numbers = #tpu.dot_dimension_numbers<[1], [0], [0], [1], [0, 0, 1, 1], [], []>} : vector<16x64xbf16>, vector<64x64xbf16>, vector<16x64xf32> -> vector<16x64xf32>
    %c0_55 = arith.constant 0 : index
    %c0_56 = arith.constant 0 : index
    %c0_57 = arith.constant 0 : index
    %142 = vector.load %arg15[%c0_55, %c0_56, %c0_57] : memref<1x1x64xf32, #tpu.memory_space<vmem>>, vector<1x1x64xf32>
    %143 = vector.shape_cast %142 : vector<1x1x64xf32> to vector<1x64xf32>
    %144 = vector.broadcast %143 : vector<1x64xf32> to vector<16x64xf32>
    %145 = arith.addf %141, %144 : vector<16x64xf32>
    %c0_58 = arith.constant 0 : index
    %c0_59 = arith.constant 0 : index
    %c0_60 = arith.constant 0 : index
    %146 = vector.load %arg16[%c0_58, %c0_59, %c0_60] : memref<1x1x64xf32, #tpu.memory_space<vmem>>, vector<1x1x64xf32>
    %147 = vector.shape_cast %146 : vector<1x1x64xf32> to vector<1x64xf32>
    %148 = vector.broadcast %147 : vector<1x64xf32> to vector<16x64xf32>
    %149 = arith.mulf %148, %145 : vector<16x64xf32>
    %150 = arith.addf %3, %149 : vector<16x64xf32>
    %c0_61 = arith.constant 0 : index
    %c0_62 = arith.constant 0 : index
    %c0_63 = arith.constant 0 : index
    %151 = vector.load %arg17[%c0_61, %c0_62, %c0_63] : memref<1x1x64xf32, #tpu.memory_space<vmem>>, vector<1x1x64xf32>
    %152 = vector.shape_cast %151 : vector<1x1x64xf32> to vector<1x64xf32>
    %c0_64 = arith.constant 0 : index
    %c0_65 = arith.constant 0 : index
    %c0_66 = arith.constant 0 : index
    %153 = vector.load %arg18[%c0_64, %c0_65, %c0_66] : memref<1x1x64xf32, #tpu.memory_space<vmem>>, vector<1x1x64xf32>
    %154 = vector.shape_cast %153 : vector<1x1x64xf32> to vector<1x64xf32>
    %cst_67 = arith.constant dense<0.000000e+00> : vector<16xf32>
    %155 = vector.multi_reduction <add>, %150, %cst_67 [1] : vector<16x64xf32> to vector<16xf32>
    %156 = vector.shape_cast %155 : vector<16xf32> to vector<16x1xf32>
    %cst_68 = arith.constant 6.400000e+01 : f32
    %157 = vector.broadcast %cst_68 : f32 to vector<16x1xf32>
    %158 = arith.divf %156, %157 : vector<16x1xf32>
    %159 = vector.broadcast %158 : vector<16x1xf32> to vector<16x64xf32>
    %160 = arith.subf %150, %159 : vector<16x64xf32>
    %161 = arith.mulf %160, %160 : vector<16x64xf32>
    %cst_69 = arith.constant dense<0.000000e+00> : vector<16xf32>
    %162 = vector.multi_reduction <add>, %161, %cst_69 [1] : vector<16x64xf32> to vector<16xf32>
    %163 = vector.shape_cast %162 : vector<16xf32> to vector<16x1xf32>
    %cst_70 = arith.constant 6.400000e+01 : f32
    %164 = vector.broadcast %cst_70 : f32 to vector<16x1xf32>
    %165 = arith.divf %163, %164 : vector<16x1xf32>
    %166 = vector.broadcast %158 : vector<16x1xf32> to vector<16x64xf32>
    %167 = arith.subf %150, %166 : vector<16x64xf32>
    %cst_71 = arith.constant 9.99999997E-7 : f32
    %168 = vector.broadcast %cst_71 : f32 to vector<16x1xf32>
    %169 = arith.addf %165, %168 : vector<16x1xf32>
    %170 = math.rsqrt %169 : vector<16x1xf32>
    %171 = vector.broadcast %170 : vector<16x1xf32> to vector<16x64xf32>
    %172 = arith.mulf %167, %171 : vector<16x64xf32>
    %173 = vector.broadcast %152 : vector<1x64xf32> to vector<16x64xf32>
    %174 = arith.mulf %172, %173 : vector<16x64xf32>
    %175 = vector.broadcast %154 : vector<1x64xf32> to vector<16x64xf32>
    %176 = arith.addf %174, %175 : vector<16x64xf32>
    %177 = arith.truncf %176 : vector<16x64xf32> to vector<16x64xbf16>
    %c0_72 = arith.constant 0 : index
    %c0_73 = arith.constant 0 : index
    %c0_74 = arith.constant 0 : index
    %178 = vector.load %arg19[%c0_72, %c0_73, %c0_74] : memref<1x64x256xbf16, #tpu.memory_space<vmem>>, vector<1x64x256xbf16>
    %179 = vector.shape_cast %178 : vector<1x64x256xbf16> to vector<64x256xbf16>
    %cst_75 = arith.constant dense<0.000000e+00> : vector<16x256xf32>
    %180 = tpu.matmul %177, %179, %cst_75 {dimension_numbers = #tpu.dot_dimension_numbers<[1], [0], [0], [1], [0, 0, 1, 1], [], []>} : vector<16x64xbf16>, vector<64x256xbf16>, vector<16x256xf32> -> vector<16x256xf32>
    %c0_76 = arith.constant 0 : index
    %c0_77 = arith.constant 0 : index
    %c0_78 = arith.constant 0 : index
    %181 = vector.load %arg20[%c0_76, %c0_77, %c0_78] : memref<1x1x256xf32, #tpu.memory_space<vmem>>, vector<1x1x256xf32>
    %182 = vector.shape_cast %181 : vector<1x1x256xf32> to vector<1x256xf32>
    %183 = vector.broadcast %182 : vector<1x256xf32> to vector<16x256xf32>
    %184 = arith.addf %180, %183 : vector<16x256xf32>
    %185 = arith.mulf %184, %184 : vector<16x256xf32>
    %186 = arith.mulf %184, %185 : vector<16x256xf32>
    %cst_79 = arith.constant 4.471500e-02 : f32
    %187 = vector.broadcast %cst_79 : f32 to vector<16x256xf32>
    %188 = arith.mulf %187, %186 : vector<16x256xf32>
    %189 = arith.addf %184, %188 : vector<16x256xf32>
    %cst_80 = arith.constant 0.797884583 : f32
    %190 = vector.broadcast %cst_80 : f32 to vector<16x256xf32>
    %191 = arith.mulf %190, %189 : vector<16x256xf32>
    %192 = math.tanh %191 : vector<16x256xf32>
    %cst_81 = arith.constant 1.000000e+00 : f32
    %193 = vector.broadcast %cst_81 : f32 to vector<16x256xf32>
    %194 = arith.addf %193, %192 : vector<16x256xf32>
    %cst_82 = arith.constant 5.000000e-01 : f32
    %195 = vector.broadcast %cst_82 : f32 to vector<16x256xf32>
    %196 = arith.mulf %195, %194 : vector<16x256xf32>
    %197 = arith.mulf %184, %196 : vector<16x256xf32>
    %198 = arith.truncf %197 : vector<16x256xf32> to vector<16x256xbf16>
    %c0_83 = arith.constant 0 : index
    %c0_84 = arith.constant 0 : index
    %c0_85 = arith.constant 0 : index
    %199 = vector.load %arg21[%c0_83, %c0_84, %c0_85] : memref<1x256x64xbf16, #tpu.memory_space<vmem>>, vector<1x256x64xbf16>
    %200 = vector.shape_cast %199 : vector<1x256x64xbf16> to vector<256x64xbf16>
    %cst_86 = arith.constant dense<0.000000e+00> : vector<16x64xf32>
    %201 = tpu.matmul %198, %200, %cst_86 {dimension_numbers = #tpu.dot_dimension_numbers<[1], [0], [0], [1], [0, 0, 1, 1], [], []>} : vector<16x256xbf16>, vector<256x64xbf16>, vector<16x64xf32> -> vector<16x64xf32>
    %c0_87 = arith.constant 0 : index
    %c0_88 = arith.constant 0 : index
    %c0_89 = arith.constant 0 : index
    %202 = vector.load %arg22[%c0_87, %c0_88, %c0_89] : memref<1x1x64xf32, #tpu.memory_space<vmem>>, vector<1x1x64xf32>
    %203 = vector.shape_cast %202 : vector<1x1x64xf32> to vector<1x64xf32>
    %204 = vector.broadcast %203 : vector<1x64xf32> to vector<16x64xf32>
    %205 = arith.addf %201, %204 : vector<16x64xf32>
    %c0_90 = arith.constant 0 : index
    %c0_91 = arith.constant 0 : index
    %c0_92 = arith.constant 0 : index
    %206 = vector.load %arg23[%c0_90, %c0_91, %c0_92] : memref<1x1x64xf32, #tpu.memory_space<vmem>>, vector<1x1x64xf32>
    %207 = vector.shape_cast %206 : vector<1x1x64xf32> to vector<1x64xf32>
    %208 = vector.broadcast %207 : vector<1x64xf32> to vector<16x64xf32>
    %209 = arith.mulf %208, %205 : vector<16x64xf32>
    %210 = arith.addf %150, %209 : vector<16x64xf32>
    %c0_93 = arith.constant 0 : index
    %c0_94 = arith.constant 0 : index
    %211 = vector.load %arg30[%c0_93, %c0_94] : memref<16x64xf32, #tpu.memory_space<vmem>>, vector<16x64xf32>
    tpu.vector_store %arg30[%c0_93, %c0_94], %210 {strides = array<i32>} : memref<16x64xf32, #tpu.memory_space<vmem>>, vector<16x64xf32>,
    %c1_i32 = arith.constant 1 : i32
    %212 = arith.cmpi eq, %arg1, %c1_i32 : i32
    %213 = arith.extui %212 : i1 to i32
    %c0_i32_95 = arith.constant 0 : i32
    %214 = arith.cmpi ne, %213, %c0_i32_95 : i32
    scf.if %214 {
      %215 = vector.shape_cast %210 : vector<16x64xf32> to vector<2x8x64xf32>
      %216 = vector.extract_strided_slice %215 {offsets = [0, 0, 0], sizes = [2, 1, 64], strides = [1, 1, 1]} : vector<2x8x64xf32> to vector<2x1x64xf32>
      %217 = vector.shape_cast %216 : vector<2x1x64xf32> to vector<2x64xf32>
      %c0_96 = arith.constant 0 : index
      %c0_97 = arith.constant 0 : index
      %218 = vector.load %arg24[%c0_96, %c0_97] : memref<1x64xf32, #tpu.memory_space<vmem>>, vector<1x64xf32>
      %c0_98 = arith.constant 0 : index
      %c0_99 = arith.constant 0 : index
      %219 = vector.load %arg25[%c0_98, %c0_99] : memref<1x64xf32, #tpu.memory_space<vmem>>, vector<1x64xf32>
      %cst_100 = arith.constant dense<0.000000e+00> : vector<2xf32>
      %220 = vector.multi_reduction <add>, %217, %cst_100 [1] : vector<2x64xf32> to vector<2xf32>
      %221 = vector.shape_cast %220 : vector<2xf32> to vector<2x1xf32>
      %cst_101 = arith.constant 6.400000e+01 : f32
      %222 = vector.broadcast %cst_101 : f32 to vector<2x1xf32>
      %223 = arith.divf %221, %222 : vector<2x1xf32>
      %224 = vector.broadcast %223 : vector<2x1xf32> to vector<2x64xf32>
      %225 = arith.subf %217, %224 : vector<2x64xf32>
      %226 = arith.mulf %225, %225 : vector<2x64xf32>
      %cst_102 = arith.constant dense<0.000000e+00> : vector<2xf32>
      %227 = vector.multi_reduction <add>, %226, %cst_102 [1] : vector<2x64xf32> to vector<2xf32>
      %228 = vector.shape_cast %227 : vector<2xf32> to vector<2x1xf32>
      %cst_103 = arith.constant 6.400000e+01 : f32
      %229 = vector.broadcast %cst_103 : f32 to vector<2x1xf32>
      %230 = arith.divf %228, %229 : vector<2x1xf32>
      %231 = vector.broadcast %223 : vector<2x1xf32> to vector<2x64xf32>
      %232 = arith.subf %217, %231 : vector<2x64xf32>
      %cst_104 = arith.constant 9.99999997E-7 : f32
      %233 = vector.broadcast %cst_104 : f32 to vector<2x1xf32>
      %234 = arith.addf %230, %233 : vector<2x1xf32>
      %235 = math.rsqrt %234 : vector<2x1xf32>
      %236 = vector.broadcast %235 : vector<2x1xf32> to vector<2x64xf32>
      %237 = arith.mulf %232, %236 : vector<2x64xf32>
      %238 = vector.broadcast %218 : vector<1x64xf32> to vector<2x64xf32>
      %239 = arith.mulf %237, %238 : vector<2x64xf32>
      %240 = vector.broadcast %219 : vector<1x64xf32> to vector<2x64xf32>
      %241 = arith.addf %239, %240 : vector<2x64xf32>
      %242 = arith.truncf %241 : vector<2x64xf32> to vector<2x64xbf16>
      %c0_105 = arith.constant 0 : index
      %c0_106 = arith.constant 0 : index
      %243 = vector.load %arg26[%c0_105, %c0_106] : memref<64x128xbf16, #tpu.memory_space<vmem>>, vector<64x128xbf16>
      %cst_107 = arith.constant dense<0.000000e+00> : vector<2x128xf32>
      %244 = tpu.matmul %242, %243, %cst_107 {dimension_numbers = #tpu.dot_dimension_numbers<[1], [0], [0], [1], [0, 0, 1, 1], [], []>} : vector<2x64xbf16>, vector<64x128xbf16>, vector<2x128xf32> -> vector<2x128xf32>
      %c0_108 = arith.constant 0 : index
      %c0_109 = arith.constant 0 : index
      %245 = vector.load %arg27[%c0_108, %c0_109] : memref<1x128xf32, #tpu.memory_space<vmem>>, vector<1x128xf32>
      %246 = vector.broadcast %245 : vector<1x128xf32> to vector<2x128xf32>
      %247 = arith.addf %244, %246 : vector<2x128xf32>
      %cst_110 = arith.constant 5.000000e-01 : f32
      %248 = vector.broadcast %cst_110 : f32 to vector<2x128xf32>
      %249 = arith.cmpf ogt, %247, %248 : vector<2x128xf32>
      %250 = arith.extui %249 : vector<2x128xi1> to vector<2x128xi32>
      %251 = arith.sitofp %250 : vector<2x128xi32> to vector<2x128xf32>
      %c0_111 = arith.constant 0 : index
      %c0_112 = arith.constant 0 : index
      %252 = vector.load %arg28[%c0_111, %c0_112] : memref<2x128xf32, #tpu.memory_space<vmem>>, vector<2x128xf32>
      tpu.vector_store %arg28[%c0_111, %c0_112], %251 {strides = array<i32>} : memref<2x128xf32, #tpu.memory_space<vmem>>, vector<2x128xf32>,
      %253 = arith.subf %251, %247 : vector<2x128xf32>
      %254 = arith.mulf %253, %253 : vector<2x128xf32>
      %c0_113 = arith.constant 0 : index
      %c0_114 = arith.constant 0 : index
      %255 = vector.load %arg29[%c0_113, %c0_114] : memref<2x128xf32, #tpu.memory_space<vmem>>, vector<2x128xf32>
      tpu.vector_store %arg29[%c0_113, %c0_114], %254 {strides = array<i32>} : memref<2x128xf32, #tpu.memory_space<vmem>>, vector<2x128xf32>,
    } else {
    }
    return
  }
  func.func @transform_0(%arg0: i32, %arg1: i32) -> (i32, i32) {
    %c0_i32 = arith.constant 0 : i32
    %c0_i32_0 = arith.constant 0 : i32
    return %arg0, %c0_i32 : i32, i32
  }
  func.func @transform_1(%arg0: i32, %arg1: i32) -> (i32, i32) {
    %c0_i32 = arith.constant 0 : i32
    %c0_i32_0 = arith.constant 0 : i32
    %c0_i32_1 = arith.constant 0 : i32
    return %c0_i32, %c0_i32_0 : i32, i32
  }
  func.func @transform_2(%arg0: i32, %arg1: i32) -> (i32, i32) {
    %c0_i32 = arith.constant 0 : i32
    %c0_i32_0 = arith.constant 0 : i32
    %c0_i32_1 = arith.constant 0 : i32
    return %c0_i32, %c0_i32_0 : i32, i32
  }
  func.func @transform_3(%arg0: i32, %arg1: i32) -> (i32, i32) {
    %c0_i32 = arith.constant 0 : i32
    %c0_i32_0 = arith.constant 0 : i32
    %c0_i32_1 = arith.constant 0 : i32
    return %c0_i32, %c0_i32_0 : i32, i32
  }
  func.func @transform_4(%arg0: i32, %arg1: i32) -> (i32, i32, i32) {
    %c0_i32 = arith.constant 0 : i32
    %c0_i32_0 = arith.constant 0 : i32
    %c0_i32_1 = arith.constant 0 : i32
    return %arg1, %c0_i32, %c0_i32_0 : i32, i32, i32
  }
  func.func @transform_5(%arg0: i32, %arg1: i32) -> (i32, i32, i32) {
    %c0_i32 = arith.constant 0 : i32
    %c0_i32_0 = arith.constant 0 : i32
    %c0_i32_1 = arith.constant 0 : i32
    return %arg1, %c0_i32, %c0_i32_0 : i32, i32, i32
  }
  func.func @transform_6(%arg0: i32, %arg1: i32) -> (i32, i32, i32) {
    %c0_i32 = arith.constant 0 : i32
    %c0_i32_0 = arith.constant 0 : i32
    %c0_i32_1 = arith.constant 0 : i32
    return %arg1, %c0_i32, %c0_i32_0 : i32, i32, i32
  }
  func.func @transform_7(%arg0: i32, %arg1: i32) -> (i32, i32, i32) {
    %c0_i32 = arith.constant 0 : i32
    %c0_i32_0 = arith.constant 0 : i32
    %c0_i32_1 = arith.constant 0 : i32
    return %arg1, %c0_i32, %c0_i32_0 : i32, i32, i32
  }
  func.func @transform_8(%arg0: i32, %arg1: i32) -> (i32, i32, i32) {
    %c0_i32 = arith.constant 0 : i32
    %c0_i32_0 = arith.constant 0 : i32
    %c0_i32_1 = arith.constant 0 : i32
    return %arg1, %c0_i32, %c0_i32_0 : i32, i32, i32
  }
  func.func @transform_9(%arg0: i32, %arg1: i32) -> (i32, i32, i32) {
    %c0_i32 = arith.constant 0 : i32
    %c0_i32_0 = arith.constant 0 : i32
    %c0_i32_1 = arith.constant 0 : i32
    return %arg1, %c0_i32, %c0_i32_0 : i32, i32, i32
  }
  func.func @transform_10(%arg0: i32, %arg1: i32) -> (i32, i32, i32) {
    %c0_i32 = arith.constant 0 : i32
    %c0_i32_0 = arith.constant 0 : i32
    %c0_i32_1 = arith.constant 0 : i32
    return %arg1, %c0_i32, %c0_i32_0 : i32, i32, i32
  }
  func.func @transform_11(%arg0: i32, %arg1: i32) -> (i32, i32, i32) {
    %c0_i32 = arith.constant 0 : i32
    %c0_i32_0 = arith.constant 0 : i32
    %c0_i32_1 = arith.constant 0 : i32
    return %arg1, %c0_i32, %c0_i32_0 : i32, i32, i32
  }
  func.func @transform_12(%arg0: i32, %arg1: i32) -> (i32, i32, i32) {
    %c0_i32 = arith.constant 0 : i32
    %c0_i32_0 = arith.constant 0 : i32
    %c0_i32_1 = arith.constant 0 : i32
    return %arg1, %c0_i32, %c0_i32_0 : i32, i32, i32
  }
  func.func @transform_13(%arg0: i32, %arg1: i32) -> (i32, i32, i32) {
    %c0_i32 = arith.constant 0 : i32
    %c0_i32_0 = arith.constant 0 : i32
    %c0_i32_1 = arith.constant 0 : i32
    return %arg1, %c0_i32, %c0_i32_0 : i32, i32, i32
  }
  func.func @transform_14(%arg0: i32, %arg1: i32) -> (i32, i32, i32) {
    %c0_i32 = arith.constant 0 : i32
    %c0_i32_0 = arith.constant 0 : i32
    %c0_i32_1 = arith.constant 0 : i32
    return %arg1, %c0_i32, %c0_i32_0 : i32, i32, i32
  }
  func.func @transform_15(%arg0: i32, %arg1: i32) -> (i32, i32, i32) {
    %c0_i32 = arith.constant 0 : i32
    %c0_i32_0 = arith.constant 0 : i32
    %c0_i32_1 = arith.constant 0 : i32
    return %arg1, %c0_i32, %c0_i32_0 : i32, i32, i32
  }
  func.func @transform_16(%arg0: i32, %arg1: i32) -> (i32, i32, i32) {
    %c0_i32 = arith.constant 0 : i32
    %c0_i32_0 = arith.constant 0 : i32
    %c0_i32_1 = arith.constant 0 : i32
    return %arg1, %c0_i32, %c0_i32_0 : i32, i32, i32
  }
  func.func @transform_17(%arg0: i32, %arg1: i32) -> (i32, i32, i32) {
    %c0_i32 = arith.constant 0 : i32
    %c0_i32_0 = arith.constant 0 : i32
    %c0_i32_1 = arith.constant 0 : i32
    return %arg1, %c0_i32, %c0_i32_0 : i32, i32, i32
  }
  func.func @transform_18(%arg0: i32, %arg1: i32) -> (i32, i32, i32) {
    %c0_i32 = arith.constant 0 : i32
    %c0_i32_0 = arith.constant 0 : i32
    %c0_i32_1 = arith.constant 0 : i32
    return %arg1, %c0_i32, %c0_i32_0 : i32, i32, i32
  }
  func.func @transform_19(%arg0: i32, %arg1: i32) -> (i32, i32, i32) {
    %c0_i32 = arith.constant 0 : i32
    %c0_i32_0 = arith.constant 0 : i32
    %c0_i32_1 = arith.constant 0 : i32
    return %arg1, %c0_i32, %c0_i32_0 : i32, i32, i32
  }
  func.func @transform_20(%arg0: i32, %arg1: i32) -> (i32, i32, i32) {
    %c0_i32 = arith.constant 0 : i32
    %c0_i32_0 = arith.constant 0 : i32
    %c0_i32_1 = arith.constant 0 : i32
    return %arg1, %c0_i32, %c0_i32_0 : i32, i32, i32
  }
  func.func @transform_21(%arg0: i32, %arg1: i32) -> (i32, i32, i32) {
    %c0_i32 = arith.constant 0 : i32
    %c0_i32_0 = arith.constant 0 : i32
    %c0_i32_1 = arith.constant 0 : i32
    return %arg1, %c0_i32, %c0_i32_0 : i32, i32, i32
  }
  func.func @transform_22(%arg0: i32, %arg1: i32) -> (i32, i32) {
    %c0_i32 = arith.constant 0 : i32
    %c0_i32_0 = arith.constant 0 : i32
    %c0_i32_1 = arith.constant 0 : i32
    return %c0_i32, %c0_i32_0 : i32, i32
  }
  func.func @transform_23(%arg0: i32, %arg1: i32) -> (i32, i32) {
    %c0_i32 = arith.constant 0 : i32
    %c0_i32_0 = arith.constant 0 : i32
    %c0_i32_1 = arith.constant 0 : i32
    return %c0_i32, %c0_i32_0 : i32, i32
  }
  func.func @transform_24(%arg0: i32, %arg1: i32) -> (i32, i32) {
    %c0_i32 = arith.constant 0 : i32
    %c0_i32_0 = arith.constant 0 : i32
    %c0_i32_1 = arith.constant 0 : i32
    return %c0_i32, %c0_i32_0 : i32, i32
  }
  func.func @transform_25(%arg0: i32, %arg1: i32) -> (i32, i32) {
    %c0_i32 = arith.constant 0 : i32
    %c0_i32_0 = arith.constant 0 : i32
    %c0_i32_1 = arith.constant 0 : i32
    return %c0_i32, %c0_i32_0 : i32, i32
  }
  func.func @transform_26(%arg0: i32, %arg1: i32) -> (i32, i32) {
    %c0_i32 = arith.constant 0 : i32
    %c0_i32_0 = arith.constant 0 : i32
    return %arg0, %c0_i32 : i32, i32
  }
  func.func @transform_27(%arg0: i32, %arg1: i32) -> (i32, i32) {
    %c0_i32 = arith.constant 0 : i32
    %c0_i32_0 = arith.constant 0 : i32
    return %arg0, %c0_i32 : i32, i32
  }
}

</mosaic_0001>

<bundles_post_ra>
// kernel: tpu_custom_call.1
= control target key start
LH: loop header
LB: loop body
LE: loop exit
PB: predicated region body
PF: predicated region fallthrough
CT: control target
= control target key end

     0   :  { %s4762_s0 = inlined_call_operand.vmem [shape: bf16[16,192], index: 0, kind: input, shape index: {}]   ;;  %s4763_s1 = inlined_call_operand.vmem [shape: bf16[192,64], index: 1, kind: input, shape index: {}]   ;;  %s4764_s2 = inlined_call_operand.vmem [shape: f32[1,64], index: 2, kind: input, shape index: {}]   ;;  %s4765_s3 = inlined_call_operand.vmem [shape: f32[8,64], index: 3, kind: input, shape index: {}]   ;;  %s4766_s4 = inlined_call_operand.vmem [shape: f32[2,1,64], index: 4, kind: input, shape index: {}]   ;;  %s4767_s5 = inlined_call_operand.vmem [shape: f32[2,1,64], index: 5, kind: input, shape index: {}]   ;;  %s4768_s6 = inlined_call_operand.vmem [shape: bf16[2,64,64], index: 6, kind: input, shape index: {}]   ;;  %s4769_s7 = inlined_call_operand.vmem [shape: bf16[2,64,64], index: 7, kind: input, shape index: {}]   ;;  %s4770_s8 = inlined_call_operand.vmem [shape: bf16[2,64,64], index: 8, kind: input, shape index: {}]   ;;  %s4771_s9 = inlined_call_operand.vmem [shape: f32[2,1,64], index: 9, kind: input, shape index: {}]   ;;  %s4772_s10 = inlined_call_operand.vmem [shape: f32[2,1,64], index: 10, kind: input, shape index: {}]   ;;  %s4773_s11 = inlined_call_operand.vmem [shape: f32[2,1,64], index: 11, kind: input, shape index: {}]   ;;  %s4774_s12 = inlined_call_operand.vmem [shape: bf16[2,64,64], index: 12, kind: input, shape index: {}]   ;;  %s4775_s13 = inlined_call_operand.vmem [shape: f32[2,1,64], index: 13, kind: input, shape index: {}]   ;;  %s4776_s14 = inlined_call_operand.vmem [shape: f32[2,1,64], index: 14, kind: input, shape index: {}]   ;;  %s4777_s15 = inlined_call_operand.vmem [shape: f32[2,1,64], index: 15, kind: input, shape index: {}]   ;;  %s4778_s16 = inlined_call_operand.vmem [shape: f32[2,1,64], index: 16, kind: input, shape index: {}]   ;;  %s4779_s17 = inlined_call_operand.vmem [shape: bf16[2,64,256], index: 17, kind: input, shape index: {}]   ;;  %s4780_s18 = inlined_call_operand.vmem [shape: f32[2,1,256], index: 18, kind: input, shape index: {}]   ;;  %s4781_s19 = inlined_call_operand.vmem [shape: bf16[2,256,64], index: 19, kind: input, shape index: {}]   ;;  %s4782_s20 = inlined_call_operand.vmem [shape: f32[2,1,64], index: 20, kind: input, shape index: {}]   ;;  %s4783_s21 = inlined_call_operand.vmem [shape: f32[2,1,64], index: 21, kind: input, shape index: {}]   ;;  %s4784_s22 = inlined_call_operand.vmem [shape: f32[1,64], index: 22, kind: input, shape index: {}]   ;;  %s4785_s23 = inlined_call_operand.vmem [shape: f32[1,64], index: 23, kind: input, shape index: {}]   ;;  %s4786_s24 = inlined_call_operand.vmem [shape: bf16[64,128], index: 24, kind: input, shape index: {}]   ;;  %s4787_s25 = inlined_call_operand.vmem [shape: f32[1,128], index: 25, kind: input, shape index: {}]   ;;  %s4788_s26 = inlined_call_operand.hbm [shape: f32[2,128], index: 26, kind: output, shape index: {0}]   ;;  %s4789_s27 = inlined_call_operand.hbm [shape: f32[2,128], index: 27, kind: output, shape index: {1}]  }
   0x1   :  { %4800 = sst [smem:[#allocation15_spill]] %s4762_s0 }
   0x2   :  { %4801 = sst [smem:[#allocation16_spill]] %s4763_s1 }
   0x3   :  { %4802 = sst [smem:[#allocation17_spill]] %s4764_s2 }
   0x4   :  { %4803 = sst [smem:[#allocation18_spill]] %s4765_s3 }
   0x5   :  { %4804 = sst [smem:[#allocation19_spill]] %s4766_s4 }
   0x6   :  { %4805 = sst [smem:[#allocation20_spill]] %s4767_s5 }
   0x7   :  { %4806 = sst [smem:[#allocation21_spill]] %s4768_s6 }
   0x8   :  { %4807 = sst [smem:[#allocation22_spill]] %s4769_s7 }
   0x9   :  { %4808 = sst [smem:[#allocation23_spill]] %s4770_s8 }
   0xa   :  { %4809 = sst [smem:[#allocation24_spill]] %s4771_s9 }
   0xb   :  { %4810 = sst [smem:[#allocation25_spill]] %s4772_s10 }
   0xc   :  { %4811 = sst [smem:[#allocation26_spill]] %s4773_s11 }
   0xd   :  { %4812 = sst [smem:[#allocation27_spill]] %s4784_s22 }
   0xe   :  { %4813 = sst [smem:[#allocation28_spill]] %s4785_s23 }
   0xf   :  { %4814 = sst [smem:[#allocation29_spill]] %s4786_s24 }
  0x10   :  { %4815 = sst [smem:[#allocation30_spill]] %s4787_s25 }
  0x11   :  { %4816 = sst [smem:[#allocation31_spill]] %s4788_s26 }
  0x12   :  { %4817 = sst [smem:[#allocation32_spill]] %s4789_s27 }
  0x13   :  { %33 = vsyncpa [#allocation4], 0 }
  0x14   :  { %34 = vsyncpa [#allocation6], 0  ;;  %s4186_s7 = smov 0   ;;  %s4188_s4 = smov 0  }
  0x15   :  { %s4190_s8 = smov 0  }
  0x16 LB: > { %4818 = sst [smem:[#allocation9_spill]] %s4025_s4  ;;  %s49_s9 = sadd.s32 1, %s4025_s4  ;;  %s4029_s8 = sphi %s4190_s8, %s40_s8   ;;  %s4025_s4 = sphi %s4188_s4, %s4863_s4   ;;  %s4021_s7 = sphi %s4186_s7, %s4862_s7  }
  0x17   : > { %4819 = sst [smem:[#allocation10_spill]] %s4029_s8  ;;  %p50_p0 = scmp.ge.s32.totalorder %s49_s9, 2 }
  0x18   : > { %p3406_p1 = scmp.ge.s32.totalorder %s4029_s8, 1  ;;  %p913_p2 = scmp.lt.s32.totalorder %s4029_s8, 3 }
  0x19   : > { %s4865_s9 = smov (%p50_p0, %s49_s9), 0 }
  0x1a   : > { %4820 = sst [smem:[#allocation11_spill]] %s4865_s9  ;;  %p914_p3 = pnand %p3406_p1, %p913_p2 }
  0x1c   : > { %917 = sbr.rel (%p914_p3) target bundleno = 4999 (0x1387), region = 124 }
  0x23   : > { %p1055_p4 = scmp.lt.s32.totalorder %s4021_s7, 1  ;;  %s4824_s26 = sld [smem:[#allocation21_spill]] }
  0x24   : > { %s4826_s22 = sld [smem:[#allocation22_spill]]  ;;  %s4828_s6 = sld [smem:[#allocation23_spill]] }
  0x25   : > { %s4209_s5 = scalar_select %p1055_p4, %s4021_s7, 1 }
  0x26   : > { %s4831_s4 = sld [smem:[#allocation26_spill]]  ;;  %p3420_p5 = scmp.ne.s32.totalorder %s4021_s7, 0 }
  0x27   : > { %s3525_s3 = sshll.u32 %s4209_s5, 5  ;;  %s3417_s24 = sshll.u32 %s4209_s5, 1  ;;  %v4031_v1 = vmov (!%p3420_p5), 0   ;;  %vm1241_vm0 = vcmask (!%p3420_p5), 523264  }
  0x28   : > { %s4250_s23 = scalar_lea.vmem %s4774_s12, %s3525_s3  ;;  %s4278_s1 = scalar_lea.vmem %s4780_s18, %s3417_s24  ;;  %1245 = vmatprep.subr.bf16.mxu0 (!%p3420_p5), %v4031_v1 }
  0x29   : > { %s4227_s8 = scalar_lea.vmem %s4824_s26, %s3525_s3  ;;  %s1118_s30 = scalar_lea.vmem %s4782_s20, %s4209_s5 }
  0x2a   : > { %4825 = sst [smem:[#allocation12_spill]] %s4227_s8  ;;  %s4232_s10 = scalar_lea.vmem %s4826_s22, %s3525_s3 }
  0x2b   : > { %4827 = sst [smem:[#allocation13_spill]] %s4232_s10  ;;  %s4237_s11 = scalar_lea.vmem %s4828_s6, %s3525_s3 }
  0x2c   : > { %4829 = sst [smem:[#allocation14_spill]] %s4237_s11  ;;  %s1084_s26 = scalar_lea.vmem %s4831_s4, %s4209_s5 }
  0x2d   : > { %s3529_s4 = sshll.u32 %s4209_s5, 6  ;;  %s3530_s6 = sshll.u32 %s4209_s5, 7 }
  0x2e   : > { %s4273_s0 = scalar_lea.vmem %s4779_s17, %s3529_s4  ;;  %s4288_s2 = scalar_lea.vmem %s4781_s19, %s3530_s6 }
  0x2f   : > { %s1121_s4 = scalar_lea.vmem %s4783_s21, %s4209_s5  ;;  %1126 = sbr.rel (%p3420_p5) target bundleno = 321 (0x141), region = 128 }
  0x30   : > { %s4832_s3 = sld [smem:[#allocation16_spill]] (!%p3420_p5)  ;;  %s4833_s28 = sld [smem:[#allocation15_spill]] (!%p3420_p5) }
  0x31   : > { %s4834_s8 = sld [smem:[#allocation17_spill]] (!%p3420_p5)  ;;  %s4835_s22 = sld [smem:[#allocation18_spill]] (!%p3420_p5) }
  0x36   : > { %v3817_v0 = vld [vmem:[%s4832_s3] sm:$0xff]   ;;  %v3818_v2 = vld [vmem:[%s4832_s3 + $0x8] sm:$0xff]   ;;  %v3819_v3 = vld [vmem:[%s4832_s3 + $0x10] sm:$0xff]  }
  0x37   : > { %1246 = vmatpush1.bf16.msra.mxu0 %v3817_v0  ;;  %v3820_v4 = vld [vmem:[%s4832_s3 + $0x18] sm:$0xff]   ;;  %v3831_v5 = vld [vmem:[%s4833_s28 + $0x4] ss:$8 sps:$4 sm:$0xff]   ;;  %v3823_v8 = vld [vmem:[%s4832_s3 + $0x30] sm:$0xff]  }
  0x38   : > { %1247 = vmatprep.subr.bf16.mxu0 %v4031_v1  ;;  %v3821_v6 = vld [vmem:[%s4832_s3 + $0x20] sm:$0xff]   ;;  %3436 = vmatprep.mubr.msk.bf16.mxu0 %vm1241_vm0, %v3831_v5  ;;  %v3822_v7 = vld [vmem:[%s4832_s3 + $0x28] sm:$0xff]   ;;  %v3824_v9 = vld [vmem:[%s4832_s3 + $0x38] sm:$0xff]  }
  0x39   : > { %v3825_v10 = vld [vmem:[%s4832_s3 + $0x40] sm:$0xff]   ;;  %v3826_v11 = vld [vmem:[%s4832_s3 + $0x48] sm:$0xff]   ;;  %v3827_v12 = vld [vmem:[%s4832_s3 + $0x50] sm:$0xff]  }
  0x3a   : > { %v3828_v13 = vld [vmem:[%s4832_s3 + $0x58] sm:$0xff]   ;;  %v3829_v14 = vld [vmem:[%s4833_s28] ss:$8 sps:$4 sm:$0xff]  }
  0x3b   : > { %1248 = vmatpush1.bf16.msra.mxu0 %v3818_v2  ;;  %v3421_v15 = vld [vmem:[%s4834_s8] ss:$0 sm:$0xff] }
  0x3c   : > { %1249 = vmatprep.subr.bf16.mxu0 %v4031_v1  ;;  %v1286_v17 = vld [vmem:[%s4835_s22] sm:$0xff] }
  0x3f   : > { %1250 = vmatpush1.bf16.msra.mxu0 %v3819_v3 }
  0x40   : > { %1251 = vmatprep.subr.bf16.mxu0 %v4031_v1 }
  0x43   : > { %1252 = vmatpush1.bf16.msra.mxu0 %v3820_v4 }
  0x44   : > { %1253 = vmatprep.subr.bf16.mxu0 %v4031_v1 }
  0x47   : > { %1254 = vmatpush1.bf16.msra.mxu0 %v3821_v6 }
  0x48   : > { %1255 = vmatprep.subr.bf16.mxu0 %v4031_v1 }
  0x4b   : > { %1256 = vmatpush1.bf16.msra.mxu0 %v3822_v7 }
  0x4c   : > { %1257 = vmatprep.subr.bf16.mxu0 %v4031_v1 }
  0x4f   : > { %1258 = vmatpush1.bf16.msra.mxu0 %v3823_v8 }
  0x50   : > { %1259 = vmatprep.subr.bf16.mxu0 %v4031_v1 }
  0x53   : > { %1260 = vmatpush1.bf16.msra.mxu0 %v3824_v9 }
  0x54   : > { %1261 = vmatprep.subr.bf16.mxu0 %v4031_v1 }
  0x57   : > { %1262 = vmatpush1.bf16.msra.mxu0 %v3825_v10 }
  0x58   : > { %1263 = vmatprep.subr.bf16.mxu0 %v4031_v1 }
  0x5b   : > { %1264 = vmatpush1.bf16.msra.mxu0 %v3826_v11 }
  0x5c   : > { %1265 = vmatprep.subr.bf16.mxu0 %v4031_v1 }
  0x5f   : > { %1266 = vmatpush1.bf16.msra.mxu0 %v3827_v12 }
  0x60   : > { %1267 = vmatprep.subr.bf16.mxu0 %v4031_v1 }
  0x63   : > { %1268 = vmatpush1.bf16.msra.mxu0 %v3828_v13 }
  0x66   : > { %1278 = vmatmul.mubr.bf16.vlgmr.msra.gmra.mrb[0].mxu0 %v3829_v14 }
 0x139   : > { %v1279_v16 = vpop.f32.mrb[0].mxu0 }
 0x13a   : > { %v1280_v18 = vadd.f32 %v3421_v15, %v1279_v16  ;;  %v1281_v19 = vpop.f32.mrb[1].mxu0 }
 0x13b   : > { %v1282_v20 = vpop.f32.mrb[2].mxu0 }
 0x13c   : > { %v1287_v21 = vadd.f32 %v1286_v17, %v1280_v18  ;;  %v1283_v22 = vadd.f32 %v3421_v15, %v1282_v20  ;;  %v1284_v23 = vpop.f32.mrb[3].mxu0 }
 0x13e   : > { %1289 = vst.msk [vmem:[#allocation2] sm:$0xff] %vm1241_vm0, %v1287_v21  ;;  %v1288_v24 = vadd.f32 %v1286_v17, %v1283_v22 }
 0x140   : > { %1290 = vst.msk [vmem:[#allocation2 + $0x8] sm:$0xff] %vm1241_vm0, %v1288_v24 }
 0x141 PF: > { %vm1299_vm1 = vcmask 523264   ;;  %s4836_s9 = sld [smem:[#allocation12_spill]]  ;;  %s4837_s25 = sld [smem:[#allocation14_spill]]  ;;  %v4032_v40 = vmov 0.0   ;;  %vm4033_vm2 = vmmov 0   ;;  %vm1714_vm3 = vcmask 1043456  }
 0x142   : > { %3610 = vmatprep.subr.bf16.mxu1 %v4032_v40  ;;  %3634 = vmatprep.subr.bf16.mxu0 %v4032_v40  ;;  %s4838_s29 = sld [smem:[#allocation13_spill]]  ;;  %s4839_s11 = sld [smem:[#allocation19_spill]]  ;;  %v3451_v5 = vld [vmem:[%s1084_s26] ss:$0 sm:$0xff]  ;;  %vm1593_vm4 = vcmask 130048   ;;  %vm1686_vm6 = vcmask 64512  }
 0x143   : > { %3618 = vmatprep.mubr.msk.bf16.mxu1 %vm4033_vm2, %v4032_v40  ;;  %3642 = vmatprep.mubr.msk.bf16.mxu0 %vm4033_vm2, %v4032_v40  ;;  %s4841_s22 = sld [smem:[#allocation20_spill]]  ;;  %s4036_s27 = smov 96   ;;  %vm2496_vm7 = vcmask 261120   ;;  %vm2499_vm8 = vcmask 392192  }
 0x144   : > { %s4037_s6 = smov 80   ;;  %s4038_s26 = smov 16  }
 0x145   : > { %v1291_v25 = vld [vmem:[#allocation2] sm:$0xff]  ;;  %s4848_s24 = scalar_lea.vmem %s4775_s13, %s4209_s5  ;;  %p3509_p6 = scmp.ne.s32.totalorder %s4021_s7, 1 }
 0x146   : > { %v1300_v27 = vsel %vm1299_vm1, %v1291_v25, 0.0  ;;  %vm2984_vm9 = vcmask (!%p3509_p6), 1041409   ;;  %vm2987_vm10 = vcmask (!%p3509_p6), 517120   ;;  %vm4043_vm11 = vmmov (!%p3509_p6), 0  }
 0x147   : > { %v1292_v26 = vld [vmem:[#allocation2 + $0x8] sm:$0xff]  ;;  %1301 = vadd.xlane.f32.xlu0 %v1300_v27  ;;  %v3847_v39 = vld [vmem:[%s4836_s9] sm:$0xff]   ;;  %v3851_v44 = vld [vmem:[%s4836_s9 + $0x10] sm:$0xff]  }
 0x148   : > { %v1303_v28 = vsel %vm1299_vm1, %v1292_v26, 0.0  ;;  %v3848_v41 = vld [vmem:[%s4837_s25] sm:$0xff]   ;;  %3611 = vmatpush3.bf16.msra.mxu1 %v3847_v39  ;;  %v3849_v42 = vld [vmem:[%s4836_s9 + $0x8] sm:$0xff]   ;;  %v3852_v45 = vld [vmem:[%s4837_s25 + $0x10] sm:$0xff]   ;;  %s4840_s8 = scalar_lea.vmem %s4839_s11, %s4209_s5  ;;  %s4844_s11 = sld [smem:[#allocation25_spill]] }
 0x149   : > { %3635 = vmatpush3.bf16.msra.mxu0 %v3848_v41  ;;  %3612 = vmatprep.subr.bf16.mxu1 %v4032_v40  ;;  %v3850_v43 = vld [vmem:[%s4837_s25 + $0x8] sm:$0xff]   ;;  %v3853_v46 = vld [vmem:[%s4836_s9 + $0x18] sm:$0xff]   ;;  %v3437_v56 = vld [vmem:[%s4840_s8] ss:$0 sm:$0xff]  ;;  %s4842_s9 = scalar_lea.vmem %s4841_s22, %s4209_s5  ;;  %s4846_s22 = sld [smem:[#allocation24_spill]] }
 0x14a   : > { %3636 = vmatprep.subr.bf16.mxu0 %v4032_v40  ;;  %v3854_v47 = vld [vmem:[%s4837_s25 + $0x18] sm:$0xff]   ;;  %v3438_v60 = vld [vmem:[%s4842_s9] ss:$0 sm:$0xff]  ;;  %v3856_v2 = vld [vmem:[%s4838_s29 + $0x8] sm:$0xff]   ;;  %s4035_s25 = smov 112  }
 0x14b   : > { %1304 = vadd.xlane.f32.xlu0 %v1303_v28  ;;  %v3855_v0 = vld [vmem:[%s4838_s29] sm:$0xff]   ;;  %v3857_v3 = vld [vmem:[%s4838_s29 + $0x10] sm:$0xff]   ;;  %v3858_v4 = vld [vmem:[%s4838_s29 + $0x18] sm:$0xff]   ;;  %s4039_s29 = smov 32  }
 0x14c   : > { %3613 = vmatpush3.bf16.msra.mxu1 %v3849_v42 }
 0x14d   : > { %3637 = vmatpush3.bf16.msra.mxu0 %v3850_v43  ;;  %3614 = vmatprep.subr.bf16.mxu1 %v4032_v40 }
 0x14e   : > { %3638 = vmatprep.subr.bf16.mxu0 %v4032_v40  ;;  %s4845_s8 = scalar_lea.vmem %s4844_s11, %s4209_s5  ;;  %s4040_s11 = smov 48  }
 0x14f   : > { %v3445_v17 = vld [vmem:[%s4845_s8] ss:$0 sm:$0xff]  ;;  %s4847_s9 = scalar_lea.vmem %s4846_s22, %s4209_s5 }
 0x150   : > { %3615 = vmatpush3.bf16.msra.mxu1 %v3851_v44  ;;  %v3439_v24 = vld [vmem:[%s4847_s9] ss:$0 sm:$0xff]  ;;  %s4849_s9 = scalar_lea.vmem %s4776_s14, %s4209_s5 }
 0x151   : > { %3639 = vmatpush3.bf16.msra.mxu0 %v3852_v45  ;;  %3616 = vmatprep.subr.bf16.mxu1 %v4032_v40 }
 0x152   : > { %3640 = vmatprep.subr.bf16.mxu0 %v4032_v40 }
 0x154   : > { %3617 = vmatpush3.bf16.msra.mxu1 %v3853_v46 }
 0x155   : > { %3641 = vmatpush3.bf16.msra.mxu0 %v3854_v47  ;;  %3622 = vmatprep.subr.bf16.mxu1 %v4032_v40 }
 0x156   : > { %3658 = vmatprep.subr.bf16.mxu0 %v4032_v40 }
 0x1d4   : > { %v1302_v29 = vpop.xlane.xlu0 %1301 }
 0x1d5   : > { %v1307_v30 = vmul.f32 0.015625, %v1302_v29 }
 0x1d7   : > { %v1309_v31 = vsub.f32 %v1291_v25, %v1307_v30 }
 0x1d8   : > { %v1305_v32 = vpop.xlane.xlu0 %1304 }
 0x1d9   : > { %v1308_v33 = vmul.f32 0.015625, %v1305_v32  ;;  %v1311_v34 = vmul.f32 %v1309_v31, %v1309_v31 }
 0x1db   : > { %v1310_v35 = vsub.f32 %v1292_v26, %v1308_v33  ;;  %v1313_v36 = vsel %vm1299_vm1, %v1311_v34, 0.0 }
 0x1dc   : > { %1314 = vadd.xlane.f32.xlu1 %v1313_v36  ;;  %v1293_v36 = vlaneseq }
 0x1dd   : > { %v1312_v37 = vmul.f32 %v1310_v35, %v1310_v35 }
 0x1df   : > { %v1316_v38 = vsel %vm1299_vm1, %v1312_v37, 0.0  ;;  %v1294_v37 = vand.u32 127, %v1293_v36 }
 0x1e0   : > { %1317 = vadd.xlane.f32.xlu1 %v1316_v38  ;;  %v4034_v38 = vmov -1e+30  }
 0x1e1   : > { %vm1295_vm5 = vcmp.lt.s32.totalorder %v1294_v37, 5 }
 0x1e2   : > { %v4447_v39 = vsel %vm1295_vm5, 0.0, %v4034_v38 }
 0x269   : > { %v1315_v48 = vpop.xlane.xlu1 %1314 }
 0x26a   : > { %v1319_v49 = vmul.f32 0.015625, %v1315_v48 }
 0x26c   : > { %v1321_v50 = vadd.f32 1e-06, %v1319_v49 }
 0x26d   : > { %v1318_v51 = vpop.xlane.xlu1 %1317 }
 0x26e   : > { %3891 = vrsqrt.f32 %v1321_v50  ;;  %v1320_v52 = vmul.f32 0.015625, %v1318_v51 }
 0x270   : > { %v1322_v53 = vadd.f32 1e-06, %v1320_v52 }
 0x272   : > { %3893 = vrsqrt.f32 %v1322_v53 }
 0x278   : > { %v3892_v54 = vpop.eup %3891 }
 0x279   : > { %v1325_v55 = vmul.f32 %v3892_v54, %v1309_v31 }
 0x27b   : > { %v1333_v59 = vmul.f32 %v3437_v56, %v1325_v55 }
 0x27c   : > { %v3894_v57 = vpop.eup %3893 }
 0x27d   : > { %v1326_v58 = vmul.f32 %v3894_v57, %v1310_v35  ;;  %v1341_v62 = vadd.f32 %v3438_v60, %v1333_v59 }
 0x27f   : > { %v1334_v61 = vmul.f32 %v3437_v56, %v1326_v58 }
 0x281   : > { %v1342_v63 = vadd.f32 %v3438_v60, %v1334_v61 }
 0x283   : > { %v1343_v1 = vpack.c.bf16 %v1342_v63, %v1341_v62 }
 0x285   : > { %3619 = vmatmul.mubr.msk.bf16.vlgmr.msra.gmra.mrb[0].mxu1 %vm1299_vm1, %v1343_v1  ;;  %3643 = vmatmul.mubr.msk.bf16.vlgmr.msra.gmra.mrb[0].mxu0 %vm1299_vm1, %v1343_v1 }
 0x286   : > { %3623 = vmatpush3.bf16.msra.mxu1 %v3855_v0  ;;  %3630 = vmatprep.mubr.msk.bf16.mxu1 %vm4033_vm2, %v4032_v40 }
 0x287   : > { %3624 = vmatprep.subr.bf16.mxu1 %v4032_v40  ;;  %3660 = vmatprep.mubr.msk.bf16.mxu0 %vm4033_vm2, %v4032_v40 }
 0x28a   : > { %3625 = vmatpush3.bf16.msra.mxu1 %v3856_v2 }
 0x28b   : > { %3626 = vmatprep.subr.bf16.mxu1 %v4032_v40 }
 0x28e   : > { %3627 = vmatpush3.bf16.msra.mxu1 %v3857_v3 }
 0x28f   : > { %3628 = vmatprep.subr.bf16.mxu1 %v4032_v40 }
 0x292   : > { %3629 = vmatpush3.bf16.msra.mxu1 %v3858_v4 }
 0x293   : > { %3646 = vmatprep.subr.bf16.mxu1 %v4032_v40 }
 0x295   : > { %3631 = vmatmul.mubr.msk.bf16.vlgmr.msra.gmra.mrb[4].mxu1 %vm1299_vm1, %v1343_v1 }
 0x296   : > { %3648 = vmatprep.mubr.msk.bf16.mxu1 %vm4033_vm2, %v4032_v40 }
 0x358   : > { %v1420_v6 = vpop.f32.mrb[0].mxu1  ;;  %v1580_v7 = vpop.f32.mrb[0].mxu0 }
 0x359   : > { %v1581_v8 = vadd.f32 %v3451_v5, %v1580_v7  ;;  %v3620_v9 = vpop.f32.mrb[1].mxu1  ;;  %v3644_v10 = vpop.f32.mrb[1].mxu0  ;;  %v1421_v27 = vadd.f32 %v3439_v24, %v1420_v6 }
 0x35a   : > { %v1423_v11 = vpop.f32.mrb[2].mxu1  ;;  %v1583_v12 = vpop.f32.mrb[2].mxu0 }
 0x35b   : > { %v4404_v13 = vpack.c.bf16 %v1581_v8, %v1581_v8  ;;  %v3621_v14 = vpop.f32.mrb[3].mxu1  ;;  %v3645_v15 = vpop.f32.mrb[3].mxu0  ;;  %v4426_v29 = vpack.c.bf16 %v1421_v27, %v1421_v27  ;;  %v1584_v30 = vadd.f32 %v3451_v5, %v1583_v12  ;;  %v1424_v32 = vadd.f32 %v3439_v24, %v1423_v11 }
 0x35d   : > { %v1716_v16 = vsel %vm1714_vm3, %v4404_v13, 0  ;;  %v4435_v33 = vpack.c.bf16 %v1584_v30, %v1584_v30  ;;  %v4437_v34 = vpack.c.bf16 %v1424_v32, %v1424_v32 }
 0x35e   : > { %3659 = vmatpush3.bf16.msra.mxu0 %v1716_v16 }
 0x35f   : > { %3670 = vmatprep.subr.bf16.mxu0 %v4032_v40  ;;  %v1762_v35 = vsel %vm1714_vm3, %v4435_v33, 0 }
 0x368   : > { %v1500_v18 = vpop.f32.mrb[4].mxu1 }
 0x369   : > { %v1501_v19 = vadd.f32 %v3445_v17, %v1500_v18  ;;  %v3632_v20 = vpop.f32.mrb[5].mxu1 }
 0x36a   : > { %v1503_v21 = vpop.f32.mrb[6].mxu1 }
 0x36b   : > { %v4414_v22 = vpack.c.bf16 %v1501_v19, %v1501_v19  ;;  %v3633_v23 = vpop.f32.mrb[7].mxu1  ;;  %v1504_v25 = vadd.f32 %v3445_v17, %v1503_v21 }
 0x36d   : > { %v1598_v26 = vsel %vm1593_vm4, %v4414_v22, 0  ;;  %v4424_v28 = vpack.c.bf16 %v1504_v25, %v1504_v25 }
 0x36e   : > { %3647 = vmatpush3.bf16.xpose.msra.mxu1 %v1598_v26 }
 0x36f   : > { %3652 = vmatprep.subr.bf16.mxu1 %v4032_v40  ;;  %v1644_v31 = vsel %vm1593_vm4, %v4424_v28, 0 }
 0x375   : > { %3649 = vmatmul.mubr.msk.bf16.vlgmr.msra.gmra.mrb[8].mxu1 %vm1593_vm4, %v4426_v29 }
 0x376   : > { %3653 = vmatpush3.bf16.xpose.msra.mxu1 %v1644_v31  ;;  %3654 = vmatprep.mubr.msk.bf16.mxu1 %vm4033_vm2, %v4032_v40 }
 0x377   : > { %3664 = vmatprep.subr.bf16.mxu1 %v4032_v40 }
 0x37d   : > { %3655 = vmatmul.mubr.msk.bf16.vlgmr.msra.gmra.mrb[12].mxu1 %vm1593_vm4, %v4437_v34 }
 0x37e   : > { %3665 = vmatpush3.bf16.msra.mxu1 %v1762_v35  ;;  %3666 = vmatprep.mubr.msk.bf16.mxu1 %vm4033_vm2, %v4032_v40 }
 0x37f   : > { %3676 = vmatprep.subr.bf16.mxu1 %v4032_v40 }
 0x448   : > { %v1634_v41 = vpop.f32.mrb[8].mxu1 }
 0x449   : > { %v1635_v42 = vadd.f32 %v1634_v41, %v4447_v39  ;;  %v3650_v43 = vpop.f32.mrb[9].mxu1 }
 0x44a   : > { %v1637_v44 = vpop.f32.mrb[10].mxu1 }
 0x44b   : > { %v3651_v45 = vpop.f32.mrb[11].mxu1  ;;  %v1687_v46 = vsel %vm1686_vm6, %v1635_v42, -inf }
 0x44c   : > { %1688 = vmax.xlane.f32.xlu0 %v1687_v46 }
 0x450   : > { %v1680_v47 = vpop.f32.mrb[12].mxu1 }
 0x451   : > { %v1681_v48 = vadd.f32 %v1680_v47, %v4447_v39  ;;  %v3656_v49 = vpop.f32.mrb[13].mxu1 }
 0x452   : > { %v1683_v50 = vpop.f32.mrb[14].mxu1 }
 0x453   : > { %v3657_v51 = vpop.f32.mrb[15].mxu1  ;;  %v1690_v52 = vsel %vm1686_vm6, %v1681_v48, -inf }
 0x454   : > { %1691 = vmax.xlane.f32.xlu1 %v1690_v52 }
 0x465   : > { %1860 = vrot.lane.b32.xlu1 %v4424_v28, %s4035_s25 }
 0x4d9   : > { %v1689_v53 = vpop.xlane.xlu0 %1688 }
 0x4da   : > { %v1693_v54 = vsub.f32 %v1635_v42, %v1689_v53 }
 0x4dc   : > { %v1695_v55 = vmul.f32 1.442695, %v1693_v54 }
 0x4de   : > { %3895 = vpow2.f32 %v1695_v55 }
 0x4e1   : > { %v1692_v56 = vpop.xlane.xlu1 %1691 }
 0x4e2   : > { %v1694_v57 = vsub.f32 %v1681_v48, %v1692_v56 }
 0x4e4   : > { %v1697_v58 = vmul.f32 1.442695, %v1694_v57 }
 0x4e5   : > { %v1861_v0 = vpop.permute.xlu1 %1860 }
 0x4e6   : > { %3897 = vpow2.f32 %v1697_v58  ;;  %v1866_v11 = vsel %vm1593_vm4, %v1861_v0, 0 }
 0x4e8   : > { %v3896_v59 = vpop.eup %3895 }
 0x4e9   : > { %v1699_v60 = vsel %vm1686_vm6, %v3896_v59, 0.0 }
 0x4ea   : > { %1700 = vadd.xlane.f32.xlu0 %v1699_v60 }
 0x4f0   : > { %v3898_v61 = vpop.eup %3897 }
 0x4f1   : > { %v1702_v62 = vsel %vm1686_vm6, %v3898_v61, 0.0 }
 0x4f2   : > { %1703 = vadd.xlane.f32.xlu1 %v1702_v62 }
 0x500   : > { %1808 = vrot.lane.b32.xlu0 %v4414_v22, %s4035_s25 }
 0x503   : > { %1805 = vrot.lane.b32.xlu1 %v4426_v29, %s4035_s25 }
 0x507   : > { %1857 = vrot.lane.b32.xlu1 %v4437_v34, %s4035_s25 }
 0x577   : > { %v1701_v63 = vpop.xlane.xlu0 %1700 }
 0x578   : > { %3899 = vrcp.f32 %v1701_v63 }
 0x57b   : > { %v1809_v4 = vpop.permute.xlu0 %1808 }
 0x57c   : > { %v1814_v6 = vsel %vm1593_vm4, %v1809_v4, 0 }
 0x57f   : > { %v1704_v1 = vpop.xlane.xlu1 %1703 }
 0x580   : > { %3901 = vrcp.f32 %v1704_v1 }
 0x582   : > { %v3900_v2 = vpop.eup %3899 }
 0x583   : > { %v1707_v3 = vmul.f32 %v3900_v2, %v3896_v59  ;;  %v1806_v10 = vpop.permute.xlu1 %1805 }
 0x585   : > { %v1709_v5 = vpack.c.bf16 %v1707_v3, %v1707_v3 }
 0x587   : > { %3661 = vmatmul.mubr.msk.bf16.vlgmr.msra.gmra.mrb[4].mxu0 %vm1686_vm6, %v1709_v5  ;;  %v1858_v12 = vpop.permute.xlu1 %1857 }
 0x588   : > { %3671 = vmatpush3.bf16.xpose.msra.mxu0 %v1814_v6  ;;  %3672 = vmatprep.mubr.msk.bf16.mxu0 %vm4033_vm2, %v4032_v40 }
 0x589   : > { %3682 = vmatprep.subr.bf16.mxu0 %v4032_v40 }
 0x58a   : > { %v3902_v7 = vpop.eup %3901 }
 0x58b   : > { %v1708_v8 = vmul.f32 %v3902_v7, %v3898_v61 }
 0x58d   : > { %v1710_v9 = vpack.c.bf16 %v1708_v8, %v1708_v8 }
 0x58f   : > { %3667 = vmatmul.mubr.msk.bf16.vlgmr.msra.gmra.mrb[16].mxu1 %vm1686_vm6, %v1710_v9  ;;  %3673 = vmatmul.mubr.msk.bf16.vlgmr.msra.gmra.mrb[8].mxu0 %vm1593_vm4, %v1806_v10 }
 0x590   : > { %3677 = vmatpush3.bf16.xpose.msra.mxu1 %v1866_v11  ;;  %3678 = vmatprep.mubr.msk.bf16.mxu1 %vm4033_vm2, %v4032_v40 }
 0x591   : > { %3688 = vmatprep.subr.bf16.mxu1 %v4032_v40  ;;  %3684 = vmatprep.mubr.msk.bf16.mxu0 %vm4033_vm2, %v4032_v40 }
 0x597   : > { %3679 = vmatmul.mubr.msk.bf16.vlgmr.msra.gmra.mrb[20].mxu1 %vm1593_vm4, %v1858_v12 }
 0x598   : > { %3690 = vmatprep.mubr.msk.bf16.mxu1 %vm4033_vm2, %v4032_v40 }
 0x65a   : > { %v4479_v14 = vpop.f32.mrb[4].mxu0 }
 0x65b   : > { %v3662_v15 = vpop.f32.mrb[5].mxu0 }
 0x65c   : > { %v1755_v16 = vpop.f32.mrb[6].mxu0 }
 0x65d   : > { %v3663_v17 = vpop.f32.mrb[7].mxu0 }
 0x662   : > { %v4481_v18 = vpop.f32.mrb[16].mxu1  ;;  %v1850_v19 = vpop.f32.mrb[8].mxu0 }
 0x663   : > { %v1851_v20 = vadd.f32 %v1850_v19, %v4447_v39  ;;  %v3668_v21 = vpop.f32.mrb[17].mxu1  ;;  %v3674_v23 = vpop.f32.mrb[9].mxu0 }
 0x664   : > { %v1801_v24 = vpop.f32.mrb[18].mxu1  ;;  %v1853_v25 = vpop.f32.mrb[10].mxu0 }
 0x665   : > { %v3669_v26 = vpop.f32.mrb[19].mxu1  ;;  %v3675_v27 = vpop.f32.mrb[11].mxu0  ;;  %v1908_v30 = vsel %vm1686_vm6, %v1851_v20, -inf }
 0x666   : > { %1909 = vmax.xlane.f32.xlu0 %v1908_v30 }
 0x66a   : > { %v1902_v31 = vpop.f32.mrb[20].mxu1 }
 0x66b   : > { %v1903_v32 = vadd.f32 %v1902_v31, %v4447_v39  ;;  %v3680_v35 = vpop.f32.mrb[21].mxu1 }
 0x66c   : > { %v1905_v37 = vpop.f32.mrb[22].mxu1 }
 0x66d   : > { %v3681_v38 = vpop.f32.mrb[23].mxu1  ;;  %v1911_v41 = vsel %vm1686_vm6, %v1903_v32, -inf }
 0x66e   : > { %1912 = vmax.xlane.f32.xlu1 %v1911_v41 }
 0x67f   : > { %1982 = vrot.lane.b32.xlu1 %v4435_v33, %s4035_s25 }
 0x683   : > { %2032 = vrot.lane.b32.xlu1 %v4414_v22, %s4036_s27 }
 0x687   : > { %2082 = vrot.lane.b32.xlu1 %v4424_v28, %s4036_s27 }
 0x68b   : > { %2080 = vrot.lane.b32.xlu1 %v4437_v34, %s4036_s27 }
 0x6f3   : > { %v1910_v42 = vpop.xlane.xlu0 %1909 }
 0x6f4   : > { %v1914_v43 = vsub.f32 %v1851_v20, %v1910_v42 }
 0x6f6   : > { %v1916_v44 = vmul.f32 1.442695, %v1914_v43 }
 0x6f8   : > { %3903 = vpow2.f32 %v1916_v44 }
 0x6fb   : > { %v1913_v45 = vpop.xlane.xlu1 %1912 }
 0x6fc   : > { %v1915_v46 = vsub.f32 %v1903_v32, %v1913_v45 }
 0x6fe   : > { %v1918_v47 = vmul.f32 1.442695, %v1915_v46 }
 0x6ff   : > { %v1983_v48 = vpop.permute.xlu1 %1982 }
 0x700   : > { %3905 = vpow2.f32 %v1918_v47  ;;  %v1988_v49 = vsel %vm1714_vm3, %v1983_v48, 0 }
 0x701   : > { %3689 = vmatpush3.bf16.msra.mxu1 %v1988_v49 }
 0x702   : > { %v3904_v50 = vpop.eup %3903  ;;  %3700 = vmatprep.subr.bf16.mxu1 %v4032_v40 }
 0x703   : > { %v1920_v51 = vsel %vm1686_vm6, %v3904_v50, 0.0  ;;  %v2033_v61 = vpop.permute.xlu1 %2032 }
 0x704   : > { %1921 = vadd.xlane.f32.xlu0 %v1920_v51  ;;  %v2038_v1 = vsel %vm1593_vm4, %v2033_v61, 0 }
 0x707   : > { %v2083_v0 = vpop.permute.xlu1 %2082 }
 0x708   : > { %v2088_v3 = vsel %vm1593_vm4, %v2083_v0, 0 }
 0x70a   : > { %v3906_v52 = vpop.eup %3905 }
 0x70b   : > { %v1923_v53 = vsel %vm1686_vm6, %v3906_v52, 0.0  ;;  %v2081_v5 = vpop.permute.xlu1 %2080 }
 0x70c   : > { %1924 = vadd.xlane.f32.xlu0 %v1923_v53 }
 0x722   : > { %1933 = vrot.lane.b32.xlu0 %v4404_v13, %s4035_s25 }
 0x726   : > { %2030 = vrot.lane.b32.xlu0 %v4426_v29, %s4036_s27 }
 0x791   : > { %v1922_v54 = vpop.xlane.xlu0 %1921 }
 0x792   : > { %3907 = vrcp.f32 %v1922_v54 }
 0x799   : > { %v1925_v55 = vpop.xlane.xlu0 %1924 }
 0x79a   : > { %3909 = vrcp.f32 %v1925_v55 }
 0x79c   : > { %v3908_v56 = vpop.eup %3907 }
 0x79d   : > { %v1928_v57 = vmul.f32 %v3908_v56, %v3904_v50  ;;  %v1934_v58 = vpop.permute.xlu0 %1933 }
 0x79e   : > { %v1939_v59 = vsel %vm1714_vm3, %v1934_v58, 0 }
 0x79f   : > { %3683 = vmatpush3.bf16.msra.mxu0 %v1939_v59  ;;  %v1930_v60 = vpack.c.bf16 %v1928_v57, %v1928_v57 }
 0x7a0   : > { %3694 = vmatprep.subr.bf16.mxu0 %v4032_v40 }
 0x7a1   : > { %v2031_v4 = vpop.permute.xlu0 %2030 }
 0x7a2   : > { %3685 = vmatmul.mubr.msk.bf16.vlgmr.msra.gmra.mrb[12].mxu0 %vm1686_vm6, %v1930_v60 }
 0x7a3   : > { %3696 = vmatprep.mubr.msk.bf16.mxu0 %vm4033_vm2, %v4032_v40 }
 0x7a4   : > { %v3910_v62 = vpop.eup %3909 }
 0x7a5   : > { %v1929_v63 = vmul.f32 %v3910_v62, %v3906_v52 }
 0x7a7   : > { %v1931_v2 = vpack.c.bf16 %v1929_v63, %v1929_v63 }
 0x7a8   : > { %3695 = vmatpush3.bf16.xpose.msra.mxu0 %v2038_v1 }
 0x7a9   : > { %3691 = vmatmul.mubr.msk.bf16.vlgmr.msra.gmra.mrb[24].mxu1 %vm1686_vm6, %v1931_v2  ;;  %3706 = vmatprep.subr.bf16.mxu0 %v4032_v40 }
 0x7aa   : > { %3701 = vmatpush3.bf16.xpose.msra.mxu1 %v2088_v3  ;;  %3702 = vmatprep.mubr.msk.bf16.mxu1 %vm4033_vm2, %v4032_v40 }
 0x7ab   : > { %3712 = vmatprep.subr.bf16.mxu1 %v4032_v40 }
 0x7af   : > { %3697 = vmatmul.mubr.msk.bf16.vlgmr.msra.gmra.mrb[16].mxu0 %vm1593_vm4, %v2031_v4 }
 0x7b0   : > { %3708 = vmatprep.mubr.msk.bf16.mxu0 %vm4033_vm2, %v4032_v40 }
 0x7b1   : > { %3703 = vmatmul.mubr.msk.bf16.vlgmr.msra.gmra.mrb[28].mxu1 %vm1593_vm4, %v2081_v5 }
 0x7b2   : > { %3714 = vmatprep.mubr.msk.bf16.mxu1 %vm4033_vm2, %v4032_v40 }
 0x875   : > { %v4521_v6 = vpop.f32.mrb[12].mxu0 }
 0x876   : > { %v3686_v7 = vpop.f32.mrb[13].mxu0 }
 0x877   : > { %v1978_v8 = vpop.f32.mrb[14].mxu0 }
 0x878   : > { %v3687_v9 = vpop.f32.mrb[15].mxu0 }
 0x87c   : > { %v4523_v10 = vpop.f32.mrb[24].mxu1 }
 0x87d   : > { %v3832_v11 = vpack.i.bf16 %v4523_v10, %v4521_v6  ;;  %v3692_v12 = vpop.f32.mrb[25].mxu1 }
 0x87e   : > { %v2027_v15 = vpop.f32.mrb[26].mxu1 }
 0x87f   : > { %v3693_v16 = vpop.f32.mrb[27].mxu1 }
 0x882   : > { %v2074_v17 = vpop.f32.mrb[16].mxu0 }
 0x883   : > { %v2075_v19 = vadd.f32 %v2074_v17, %v4447_v39  ;;  %v3698_v20 = vpop.f32.mrb[17].mxu0 }
 0x884   : > { %v2077_v21 = vpop.f32.mrb[18].mxu0  ;;  %v2124_v23 = vpop.f32.mrb[28].mxu1 }
 0x885   : > { %v2125_v24 = vadd.f32 %v2124_v23, %v4447_v39  ;;  %v3699_v25 = vpop.f32.mrb[19].mxu0  ;;  %v3704_v26 = vpop.f32.mrb[29].mxu1  ;;  %v2130_v27 = vsel %vm1686_vm6, %v2075_v19, -inf }
 0x886   : > { %2131 = vmax.xlane.f32.xlu0 %v2130_v27  ;;  %v2127_v30 = vpop.f32.mrb[30].mxu1 }
 0x887   : > { %v3705_v31 = vpop.f32.mrb[31].mxu1  ;;  %v2133_v32 = vsel %vm1686_vm6, %v2125_v24, -inf }
 0x888   : > { %2134 = vmax.xlane.f32.xlu1 %v2133_v32 }
 0x899   : > { %2202 = vrot.lane.b32.xlu1 %v4435_v33, %s4036_s27 }
 0x89d   : > { %2252 = vrot.lane.b32.xlu1 %v4414_v22, %s4037_s6 }
 0x8a1   : > { %2302 = vrot.lane.b32.xlu1 %v4424_v28, %s4037_s6 }
 0x8a5   : > { %2300 = vrot.lane.b32.xlu1 %v4437_v34, %s4037_s6 }
 0x913   : > { %v2132_v35 = vpop.xlane.xlu0 %2131 }
 0x914   : > { %v2136_v37 = vsub.f32 %v2075_v19, %v2132_v35 }
 0x915   : > { %v2135_v38 = vpop.xlane.xlu1 %2134 }
 0x916   : > { %v2138_v41 = vmul.f32 1.442695, %v2136_v37  ;;  %v2137_v42 = vsub.f32 %v2125_v24, %v2135_v38 }
 0x918   : > { %3911 = vpow2.f32 %v2138_v41  ;;  %v2140_v43 = vmul.f32 1.442695, %v2137_v42 }
 0x919   : > { %v2203_v44 = vpop.permute.xlu1 %2202 }
 0x91a   : > { %3913 = vpow2.f32 %v2140_v43  ;;  %v2208_v45 = vsel %vm1714_vm3, %v2203_v44, 0 }
 0x91b   : > { %3713 = vmatpush3.bf16.msra.mxu1 %v2208_v45 }
 0x91c   : > { %3724 = vmatprep.subr.bf16.mxu1 %v4032_v40 }
 0x91d   : > { %v2253_v52 = vpop.permute.xlu1 %2252 }
 0x921   : > { %v2303_v57 = vpop.permute.xlu1 %2302 }
 0x922   : > { %v3912_v22 = vpop.eup %3911  ;;  %v2308_v59 = vsel %vm1593_vm4, %v2303_v57, 0 }
 0x923   : > { %v2142_v28 = vsel %vm1686_vm6, %v3912_v22, 0.0 }
 0x924   : > { %v3914_v46 = vpop.eup %3913  ;;  %2143 = vadd.xlane.f32.xlu0 %v2142_v28 }
 0x925   : > { %v2145_v34 = vsel %vm1686_vm6, %v3914_v46, 0.0  ;;  %v2301_v61 = vpop.permute.xlu1 %2300 }
 0x928   : > { %2146 = vadd.xlane.f32.xlu0 %v2145_v34  ;;  %v3859_v34 = vld [vmem:[%s4250_s23] sm:$0xff]  }
 0x93e   : > { %2154 = vrot.lane.b32.xlu0 %v4404_v13, %s4036_s27  ;;  %s4850_s27 = scalar_lea.vmem %s4777_s15, %s4209_s5 }
 0x942   : > { %2250 = vrot.lane.b32.xlu0 %v4426_v29, %s4037_s6  ;;  %v2258_v29 = vsel %vm1593_vm4, %v2253_v52, 0 }
 0x9b1   : > { %v2144_v47 = vpop.xlane.xlu0 %2143 }
 0x9b2   : > { %3915 = vrcp.f32 %v2144_v47  ;;  %v3860_v47 = vld [vmem:[%s4250_s23 + $0x8] sm:$0xff]  }
 0x9b5   : > { %v2147_v48 = vpop.xlane.xlu0 %2146 }
 0x9b6   : > { %3917 = vrcp.f32 %v2147_v48  ;;  %v3861_v48 = vld [vmem:[%s4250_s23 + $0x10] sm:$0xff]  }
 0x9b9   : > { %v2155_v49 = vpop.permute.xlu0 %2154 }
 0x9ba   : > { %v2160_v50 = vsel %vm1714_vm3, %v2155_v49, 0  ;;  %v3862_v49 = vld [vmem:[%s4250_s23 + $0x18] sm:$0xff]  }
 0x9bb   : > { %3707 = vmatpush3.bf16.msra.mxu0 %v2160_v50 }
 0x9bc   : > { %v3916_v51 = vpop.eup %3915  ;;  %3718 = vmatprep.subr.bf16.mxu0 %v4032_v40 }
 0x9bd   : > { %v2150_v53 = vmul.f32 %v3916_v51, %v3912_v22  ;;  %v2251_v60 = vpop.permute.xlu0 %2250 }
 0x9bf   : > { %v2152_v54 = vpack.c.bf16 %v2150_v53, %v2150_v53 }
 0x9c0   : > { %v3918_v55 = vpop.eup %3917 }
 0x9c1   : > { %v2151_v56 = vmul.f32 %v3918_v55, %v3914_v46  ;;  %3709 = vmatmul.mubr.msk.bf16.vlgmr.msra.gmra.mrb[20].mxu0 %vm1686_vm6, %v2152_v54 }
 0x9c2   : > { %3720 = vmatprep.mubr.msk.bf16.mxu0 %vm4033_vm2, %v4032_v40 }
 0x9c3   : > { %v2153_v58 = vpack.c.bf16 %v2151_v56, %v2151_v56 }
 0x9c4   : > { %3719 = vmatpush3.bf16.xpose.msra.mxu0 %v2258_v29 }
 0x9c5   : > { %3715 = vmatmul.mubr.msk.bf16.vlgmr.msra.gmra.mrb[32].mxu1 %vm1686_vm6, %v2153_v58  ;;  %3730 = vmatprep.subr.bf16.mxu0 %v4032_v40 }
 0x9c6   : > { %3725 = vmatpush3.bf16.xpose.msra.mxu1 %v2308_v59  ;;  %3726 = vmatprep.mubr.msk.bf16.mxu1 %vm4033_vm2, %v4032_v40 }
 0x9c7   : > { %3736 = vmatprep.subr.bf16.mxu1 %v4032_v40 }
 0x9cb   : > { %3721 = vmatmul.mubr.msk.bf16.vlgmr.msra.gmra.mrb[24].mxu0 %vm1593_vm4, %v2251_v60 }
 0x9cc   : > { %3732 = vmatprep.mubr.msk.bf16.mxu0 %vm4033_vm2, %v4032_v40 }
 0x9cd   : > { %3727 = vmatmul.mubr.msk.bf16.vlgmr.msra.gmra.mrb[36].mxu1 %vm1593_vm4, %v2301_v61 }
 0x9ce   : > { %3738 = vmatprep.mubr.msk.bf16.mxu1 %vm4033_vm2, %v4032_v40 }
 0xa94   : > { %v2196_v62 = vpop.f32.mrb[20].mxu0 }
 0xa95   : > { %v3710_v63 = vpop.f32.mrb[21].mxu0 }
 0xa96   : > { %v2199_v0 = vpop.f32.mrb[22].mxu0 }
 0xa97   : > { %v3711_v1 = vpop.f32.mrb[23].mxu0 }
 0xa98   : > { %v2244_v2 = vpop.f32.mrb[32].mxu1 }
 0xa99   : > { %v3837_v3 = vpack.i.bf16 %v2244_v2, %v2196_v62  ;;  %v3716_v4 = vpop.f32.mrb[33].mxu1 }
 0xa9a   : > { %v2247_v5 = vpop.f32.mrb[34].mxu1 }
 0xa9b   : > { %v3717_v7 = vpop.f32.mrb[35].mxu1 }
 0xa9e   : > { %v2294_v8 = vpop.f32.mrb[24].mxu0 }
 0xa9f   : > { %v2295_v9 = vadd.f32 %v2294_v8, %v4447_v39  ;;  %v3722_v12 = vpop.f32.mrb[25].mxu0 }
 0xaa0   : > { %v2297_v15 = vpop.f32.mrb[26].mxu0  ;;  %v2344_v16 = vpop.f32.mrb[36].mxu1  ;;  %v3473_v12 = vld [vmem:[%s4848_s24] ss:$0 sm:$0xff] }
 0xaa1   : > { %v2345_v17 = vadd.f32 %v2344_v16, %v4447_v39  ;;  %v3723_v19 = vpop.f32.mrb[27].mxu0  ;;  %v3728_v20 = vpop.f32.mrb[37].mxu1  ;;  %v2350_v21 = vsel %vm1686_vm6, %v2295_v9, -inf }
 0xaa2   : > { %2351 = vmax.xlane.f32.xlu0 %v2350_v21  ;;  %v2347_v23 = vpop.f32.mrb[38].mxu1 }
 0xaa3   : > { %v3729_v24 = vpop.f32.mrb[39].mxu1  ;;  %v2353_v25 = vsel %vm1686_vm6, %v2345_v17, -inf  ;;  %v3939_v23 = vld [vmem:[#allocation2] sm:$0xff] }
 0xaa4   : > { %2354 = vmax.xlane.f32.xlu1 %v2353_v25 }
 0xab5   : > { %2422 = vrot.lane.b32.xlu1 %v4435_v33, %s4037_s6 }
 0xab9   : > { %3833 = vrot.lane.b32.xlu1 %v3832_v11, %s4038_s26 }
 0xabd   : > { %3838 = vrot.lane.b32.xlu1 %v3837_v3, %s4039_s29  ;;  %s4851_s29 = scalar_lea.vmem %s4778_s16, %s4209_s5 }
 0xb2f   : > { %v2352_v39 = vpop.xlane.xlu0 %2351 }
 0xb30   : > { %v2356_v26 = vsub.f32 %v2295_v9, %v2352_v39  ;;  %v3940_v39 = vld [vmem:[#allocation2 + $0x8] sm:$0xff] }
 0xb31   : > { %v2355_v27 = vpop.xlane.xlu1 %2354 }
 0xb32   : > { %v2358_v30 = vmul.f32 1.442695, %v2356_v26  ;;  %v2357_v31 = vsub.f32 %v2345_v17, %v2355_v27 }
 0xb34   : > { %3919 = vpow2.f32 %v2358_v30  ;;  %v2360_v32 = vmul.f32 1.442695, %v2357_v31 }
 0xb35   : > { %v2423_v35 = vpop.permute.xlu1 %2422 }
 0xb36   : > { %3921 = vpow2.f32 %v2360_v32  ;;  %v2428_v37 = vsel %vm1714_vm3, %v2423_v35, 0 }
 0xb37   : > { %3737 = vmatpush3.bf16.msra.mxu1 %v2428_v37 }
 0xb39   : > { %v3834_v58 = vpop.permute.xlu1 %3833 }
 0xb3a   : > { %v3836_v60 = vunpack.i.h.bf16 %v3834_v58  ;;  %v3835_v61 = vunpack.i.l.bf16 %v3834_v58  ;;  %v3481_v58 = vld [vmem:[%s4851_s29] ss:$0 sm:$0xff]  ;;  %s4854_s29 = sld [smem:[#allocation28_spill]] (!%p3509_p6) }
 0xb3c   : > { %v2495_v0 = vsel %vm1593_vm4, %v4481_v18, %v3836_v60  ;;  %v2494_v1 = vsel %vm1593_vm4, %v4479_v14, %v3835_v61  ;;  %v3479_v14 = vld [vmem:[%s4849_s9] ss:$0 sm:$0xff] }
 0xb3d   : > { %v3839_v59 = vpop.permute.xlu1 %3838 }
 0xb3e   : > { %v3920_v33 = vpop.eup %3919  ;;  %v3841_v62 = vunpack.i.h.bf16 %v3839_v59 }
 0xb3f   : > { %v2362_v38 = vsel %vm1686_vm6, %v3920_v33, 0.0 }
 0xb40   : > { %v3922_v41 = vpop.eup %3921  ;;  %2363 = vadd.xlane.f32.xlu0 %v2362_v38  ;;  %v2498_v5 = vsel %vm2496_vm7, %v2495_v0, %v3841_v62  ;;  %v3877_v0 = vld [vmem:[%s4288_s2 + $0x48] sm:$0xff]  }
 0xb41   : > { %v2365_v6 = vsel %vm1686_vm6, %v3922_v41, 0.0 }
 0xb44   : > { %2366 = vadd.xlane.f32.xlu0 %v2365_v6 }
 0xb5a   : > { %2374 = vrot.lane.b32.xlu0 %v4404_v13, %s4037_s6 }
 0xbcd   : > { %v2364_v10 = vpop.xlane.xlu0 %2363 }
 0xbce   : > { %3923 = vrcp.f32 %v2364_v10 }
 0xbd1   : > { %v2367_v11 = vpop.xlane.xlu0 %2366 }
 0xbd2   : > { %3925 = vrcp.f32 %v2367_v11 }
 0xbd5   : > { %v2375_v42 = vpop.permute.xlu0 %2374 }
 0xbd6   : > { %v2380_v43 = vsel %vm1714_vm3, %v2375_v42, 0  ;;  %v3865_v42 = vld [vmem:[%s4273_s0 + $0x4] ss:$8 sps:$4 sm:$0xff]  }
 0xbd7   : > { %3731 = vmatpush3.bf16.msra.mxu0 %v2380_v43  ;;  %v3863_v43 = vld [vmem:[%s4273_s0] ss:$8 sps:$4 sm:$0xff]   ;;  %2705 = vmatprep.subr.bf16.mxu1 %v3865_v42 }
 0xbd8   : > { %v3924_v44 = vpop.eup %3923  ;;  %3742 = vmatprep.subr.bf16.mxu0 %v4032_v40 }
 0xbd9   : > { %v2370_v45 = vmul.f32 %v3924_v44, %v3920_v33  ;;  %v3868_v44 = vld [vmem:[%s4273_s0 + $0x14] ss:$8 sps:$4 sm:$0xff]  }
 0xbdb   : > { %v2372_v22 = vpack.c.bf16 %v2370_v45, %v2370_v45  ;;  %v3866_v45 = vld [vmem:[%s4273_s0 + $0x10] ss:$8 sps:$4 sm:$0xff]  }
 0xbdc   : > { %v3926_v28 = vpop.eup %3925 }
 0xbdd   : > { %v2371_v46 = vmul.f32 %v3926_v28, %v3922_v41  ;;  %3733 = vmatmul.mubr.msk.bf16.vlgmr.msra.gmra.mrb[28].mxu0 %vm1686_vm6, %v2372_v22  ;;  %v3871_v22 = vld [vmem:[%s4273_s0 + $0x24] ss:$8 sps:$4 sm:$0xff]   ;;  %v3869_v28 = vld [vmem:[%s4273_s0 + $0x20] ss:$8 sps:$4 sm:$0xff]  }
 0xbde   : > { %3750 = vmatprep.mubr.msk.bf16.mxu0 %vm4033_vm2, %v4032_v40  ;;  %3743 = vmatpush3.bf16.msra.mxu0 %v3859_v34  ;;  %v4041_v34 = vmov 0  }
 0xbdf   : > { %v2373_v13 = vpack.c.bf16 %v2371_v46, %v2371_v46  ;;  %3744 = vmatprep.subr.bf16.mxu0 %v4032_v40  ;;  %v3872_v46 = vld [vmem:[%s4273_s0 + $0x30] ss:$8 sps:$4 sm:$0xff]  }
 0xbe1   : > { %3739 = vmatmul.mubr.msk.bf16.vlgmr.msra.gmra.mrb[40].mxu1 %vm1686_vm6, %v2373_v13  ;;  %v3874_v13 = vld [vmem:[%s4273_s0 + $0x34] ss:$8 sps:$4 sm:$0xff]  }
 0xbe2   : > { %3745 = vmatpush3.bf16.msra.mxu0 %v3860_v47  ;;  %2706 = vmatpush1.bf16.msra.mxu1 %v3863_v43 }
 0xbe3   : > { %3746 = vmatprep.subr.bf16.mxu0 %v4032_v40  ;;  %2707 = vmatprep.subr.bf16.mxu1 %v3868_v44 }
 0xbe4   : > { %2737 = vmatprep.mubr.bf16.mxu1 %v4041_v34 }
 0xbe6   : > { %3747 = vmatpush3.bf16.msra.mxu0 %v3861_v48  ;;  %2708 = vmatpush1.bf16.msra.mxu1 %v3866_v45 }
 0xbe7   : > { %3748 = vmatprep.subr.bf16.mxu0 %v4032_v40  ;;  %v3840_v40 = vunpack.i.l.bf16 %v3839_v59  ;;  %2709 = vmatprep.subr.bf16.mxu1 %v3871_v22 }
 0xbe9   : > { %v2497_v4 = vsel %vm2496_vm7, %v2494_v1, %v3840_v40  ;;  %v3875_v40 = vld [vmem:[%s4288_s2 + $0x40] sm:$0xff]   ;;  %v3878_v1 = vld [vmem:[%s4288_s2 + $0x8] sm:$0xff]  }
 0xbea   : > { %3749 = vmatpush3.bf16.msra.mxu0 %v3862_v49  ;;  %2710 = vmatpush1.bf16.msra.mxu1 %v3869_v28 }
 0xbeb   : > { %2711 = vmatprep.subr.bf16.mxu1 %v3874_v13  ;;  %3583 = vmatprep.subr.bf16.mxu0 %v3875_v40 }
 0xbee   : > { %2712 = vmatpush1.bf16.msra.mxu1 %v3872_v46 }
 0xcb0   : > { %v2416_v50 = vpop.f32.mrb[28].mxu0 }
 0xcb1   : > { %v3734_v51 = vpop.f32.mrb[29].mxu0 }
 0xcb2   : > { %v2419_v52 = vpop.f32.mrb[30].mxu0 }
 0xcb3   : > { %v3735_v53 = vpop.f32.mrb[31].mxu0 }
 0xcb4   : > { %v2464_v54 = vpop.f32.mrb[40].mxu1 }
 0xcb5   : > { %v3842_v55 = vpack.i.bf16 %v2464_v54, %v2416_v50  ;;  %v3740_v56 = vpop.f32.mrb[41].mxu1 }
 0xcb6   : > { %v2467_v57 = vpop.f32.mrb[42].mxu1 }
 0xcb7   : > { %3843 = vrot.lane.b32.xlu0 %v3842_v55, %s4040_s11  ;;  %v3741_v29 = vpop.f32.mrb[43].mxu1  ;;  %v3480_v55 = vld [vmem:[%s4850_s27] ss:$0 sm:$0xff]  ;;  %s4853_s27 = sld [smem:[#allocation27_spill]] (!%p3509_p6)  ;;  %s4855_s11 = sld [smem:[#allocation30_spill]] (!%p3509_p6) }
 0xd29   : > { %v3844_v63 = vpop.permute.xlu0 %3843 }
 0xd2a   : > { %v3846_v2 = vunpack.i.h.bf16 %v3844_v63  ;;  %v3845_v3 = vunpack.i.l.bf16 %v3844_v63  ;;  %v3876_v63 = vld [vmem:[%s4288_s2] sm:$0xff]  }
 0xd2c   : > { %v2501_v7 = vsel %vm2499_vm8, %v2498_v5, %v3846_v2  ;;  %v2500_v8 = vsel %vm2499_vm8, %v2497_v4, %v3845_v3  ;;  %v3879_v2 = vld [vmem:[%s4288_s2 + $0x50] sm:$0xff]   ;;  %v3881_v4 = vld [vmem:[%s4288_s2 + $0x58] sm:$0xff]  }
 0xd2d   : > { %v2502_v9 = vpack.c.bf16 %v2501_v7, %v2500_v8  ;;  %v3880_v3 = vld [vmem:[%s4288_s2 + $0x10] sm:$0xff]   ;;  %v3882_v5 = vld [vmem:[%s4288_s2 + $0x18] sm:$0xff]   ;;  %v3883_v7 = vld [vmem:[%s4288_s2 + $0x60] sm:$0xff]  }
 0xd2e   : > { %v3884_v8 = vld [vmem:[%s4288_s2 + $0x20] sm:$0xff]  }
 0xd2f   : > { %3751 = vmatmul.mubr.msk.bf16.vlgmr.msra.gmra.mrb[32].mxu0 %vm1299_vm1, %v2502_v9  ;;  %v3885_v9 = vld [vmem:[%s4288_s2 + $0x68] sm:$0xff]  }
 0xd30   : > { %3584 = vmatpush3.bf16.msra.mxu0 %v3876_v63 }
 0xd31   : > { %3585 = vmatprep.subr.bf16.mxu0 %v3877_v0 }
 0xd34   : > { %3586 = vmatpush3.bf16.msra.mxu0 %v3878_v1 }
 0xd35   : > { %3587 = vmatprep.subr.bf16.mxu0 %v3879_v2 }
 0xd38   : > { %3588 = vmatpush3.bf16.msra.mxu0 %v3880_v3 }
 0xd39   : > { %3589 = vmatprep.subr.bf16.mxu0 %v3881_v4 }
 0xd3c   : > { %3590 = vmatpush3.bf16.msra.mxu0 %v3882_v5  ;;  %v3491_v5 = vld [vmem:[%s1118_s30] ss:$0 sm:$0xff]  ;;  %s4852_s30 = sld [smem:[#allocation29_spill]] (!%p3509_p6) }
 0xd3d   : > { %3591 = vmatprep.subr.bf16.mxu0 %v3883_v7 }
 0xd40   : > { %3592 = vmatpush3.bf16.msra.mxu0 %v3884_v8 }
 0xd41   : > { %3593 = vmatprep.subr.bf16.mxu0 %v3885_v9 }
 0xe02   : > { %v2579_v15 = vpop.f32.mrb[32].mxu0 }
 0xe03   : > { %v2580_v18 = vadd.f32 %v3473_v12, %v2579_v15  ;;  %v3752_v16 = vpop.f32.mrb[33].mxu0  ;;  %v3887_v15 = vld [vmem:[%s4288_s2 + $0x70] sm:$0xff]  }
 0xe04   : > { %v2582_v17 = vpop.f32.mrb[34].mxu0  ;;  %v3890_v16 = vld [vmem:[%s4288_s2 + $0x38] sm:$0xff]  }
 0xe05   : > { %v2593_v19 = vmul.f32 %v3479_v14, %v2580_v18  ;;  %v2583_v20 = vadd.f32 %v3473_v12, %v2582_v17  ;;  %v3753_v21 = vpop.f32.mrb[35].mxu0  ;;  %v3886_v12 = vld [vmem:[%s4288_s2 + $0x28] sm:$0xff]   ;;  %v3889_v18 = vld [vmem:[%s4288_s2 + $0x78] sm:$0xff]   ;;  %v2653_v17 = vshrl.u32 %v1293_v36, 7 }
 0xe06   : > { %3594 = vmatpush3.bf16.msra.mxu0 %v3886_v12  ;;  %v3508_v12 = vld [vmem:[%s1121_s4] ss:$0 sm:$0xff] }
 0xe07   : > { %v4607_v24 = vadd.f32 %v3939_v23, %v2593_v19  ;;  %v2594_v25 = vmul.f32 %v3479_v14, %v2583_v20  ;;  %v3888_v14 = vld [vmem:[%s4288_s2 + $0x30] sm:$0xff]   ;;  %3595 = vmatprep.subr.bf16.mxu0 %v3887_v15  ;;  %v2654_v19 = vsub.s32 0, %v2653_v17  ;;  %v2650_v20 = vld [vmem:[%s4278_s1] sm:$0x3]  ;;  %v2658_v21 = vsub.s32 1, %v2653_v17 }
 0xe09   : > { %v4609_v26 = vadd.f32 %v3940_v39, %v2594_v25  ;;  %v2599_v27 = vsel %vm1299_vm1, %v4607_v24, 0.0  ;;  %v2655_v23 = vrot.slane %v2650_v20, %v2654_v19  ;;  %v2659_v25 = vrot.slane %v2650_v20, %v2658_v21 }
 0xe0a   : > { %2600 = vadd.xlane.f32.xlu1 %v2599_v27  ;;  %3596 = vmatpush3.bf16.msra.mxu0 %v3888_v14 }
 0xe0b   : > { %v2602_v30 = vsel %vm1299_vm1, %v4609_v26, 0.0  ;;  %3597 = vmatprep.subr.bf16.mxu0 %v3889_v18 }
 0xe0c   : > { %2603 = vadd.xlane.f32.xlu0 %v2602_v30 }
 0xe0e   : > { %3598 = vmatpush3.bf16.msra.mxu0 %v3890_v16 }
 0xe97   : > { %v2601_v31 = vpop.xlane.xlu1 %2600 }
 0xe98   : > { %v2605_v32 = vmul.f32 0.015625, %v2601_v31 }
 0xe99   : > { %v2604_v35 = vpop.xlane.xlu0 %2603 }
 0xe9a   : > { %v2607_v37 = vsub.f32 %v4607_v24, %v2605_v32  ;;  %v2606_v33 = vmul.f32 0.015625, %v2604_v35 }
 0xe9c   : > { %v2608_v38 = vsub.f32 %v4609_v26, %v2606_v33  ;;  %v2609_v41 = vmul.f32 %v2607_v37, %v2607_v37 }
 0xe9e   : > { %v2611_v6 = vsel %vm1299_vm1, %v2609_v41, 0.0  ;;  %v2610_v10 = vmul.f32 %v2608_v38, %v2608_v38 }
 0xe9f   : > { %2612 = vadd.xlane.f32.xlu0 %v2611_v6 }
 0xea0   : > { %v2614_v11 = vsel %vm1299_vm1, %v2610_v10, 0.0 }
 0xea3   : > { %2615 = vadd.xlane.f32.xlu0 %v2614_v11 }
 0xf2c   : > { %v2613_v47 = vpop.xlane.xlu0 %2612 }
 0xf2d   : > { %v2617_v48 = vmul.f32 0.015625, %v2613_v47 }
 0xf2f   : > { %v2619_v49 = vadd.f32 1e-06, %v2617_v48 }
 0xf30   : > { %v2616_v50 = vpop.xlane.xlu0 %2615 }
 0xf31   : > { %3927 = vrsqrt.f32 %v2619_v49  ;;  %v2618_v51 = vmul.f32 0.015625, %v2616_v50 }
 0xf33   : > { %v2620_v52 = vadd.f32 1e-06, %v2618_v51 }
 0xf35   : > { %3929 = vrsqrt.f32 %v2620_v52 }
 0xf3b   : > { %v3928_v53 = vpop.eup %3927 }
 0xf3c   : > { %v2623_v54 = vmul.f32 %v3928_v53, %v2607_v37 }
 0xf3e   : > { %v2631_v57 = vmul.f32 %v3480_v55, %v2623_v54 }
 0xf3f   : > { %v3930_v56 = vpop.eup %3929 }
 0xf40   : > { %v2624_v29 = vmul.f32 %v3930_v56, %v2608_v38  ;;  %v2639_v60 = vadd.f32 %v3481_v58, %v2631_v57 }
 0xf42   : > { %v2632_v59 = vmul.f32 %v3480_v55, %v2624_v29 }
 0xf44   : > { %v2640_v61 = vadd.f32 %v3481_v58, %v2632_v59 }
 0xf46   : > { %v2641_v62 = vpack.c.bf16 %v2640_v61, %v2639_v60 }
 0xf48   : > { %3490 = vmatmul.mubr.msk.bf16.vlgmr.msra.gmra.mrb[44].mxu1 %vm1299_vm1, %v2641_v62 }
0x101b   : > { %v2739_v39 = vpop.f32.mrb[44].mxu1 }
0x101c   : > { %v2740_v27 = vadd.f32 %v2739_v39, %v2655_v23  ;;  %v2741_v30 = vpop.f32.mrb[45].mxu1 }
0x101d   : > { %v2742_v31 = vadd.f32 %v2741_v30, %v2659_v25  ;;  %v2743_v32 = vpop.f32.mrb[46].mxu1 }
0x101e   : > { %v2748_v35 = vmul.f32 %v2740_v27, %v2740_v27  ;;  %v2744_v37 = vadd.f32 %v2743_v32, %v2655_v23  ;;  %v2745_v33 = vpop.f32.mrb[47].mxu1 }
0x101f   : > { %v2749_v38 = vmul.f32 %v2742_v31, %v2742_v31  ;;  %v2746_v41 = vadd.f32 %v2745_v33, %v2659_v25 }
0x1020   : > { %v2752_v6 = vmul.f32 %v2748_v35, %v2740_v27  ;;  %v2750_v10 = vmul.f32 %v2744_v37, %v2744_v37 }
0x1021   : > { %v2753_v11 = vmul.f32 %v2749_v38, %v2742_v31  ;;  %v2751_v42 = vmul.f32 %v2746_v41, %v2746_v41 }
0x1022   : > { %v2756_v36 = vmul.f32 0.044715, %v2752_v6  ;;  %v2754_v43 = vmul.f32 %v2750_v10, %v2744_v37  ;;  %v4042_v6 = vmov (!%p3509_p6), 0.0   ;;  %v3942_v10 = vld [vmem:[%s4852_s30 + $0x8] sm:$0xff] (!%p3509_p6)  }
0x1023   : > { %v2757_v44 = vmul.f32 0.044715, %v2753_v11  ;;  %v2755_v45 = vmul.f32 %v2751_v42, %v2746_v41  ;;  %3754 = vmatprep.subr.bf16.mxu0 (!%p3509_p6), %v4042_v6  ;;  %v3943_v11 = vld [vmem:[%s4852_s30 + $0x10] sm:$0xff] (!%p3509_p6)   ;;  %v3944_v42 = vld [vmem:[%s4852_s30 + $0x18] sm:$0xff] (!%p3509_p6)  }
0x1024   : > { %v2760_v22 = vadd.f32 %v2756_v36, %v2740_v27  ;;  %v2758_v28 = vmul.f32 0.044715, %v2754_v43 }
0x1025   : > { %v2761_v46 = vadd.f32 %v2757_v44, %v2742_v31  ;;  %v2759_v13 = vmul.f32 0.044715, %v2755_v45 }
0x1026   : > { %v2764_v34 = vmul.f32 0.7978846, %v2760_v22  ;;  %v2762_v47 = vadd.f32 %v2758_v28, %v2744_v37  ;;  %v3510_v22 = vld [vmem:[%s4853_s27] ss:$0 sm:$0xff] (!%p3509_p6) }
0x1027   : > { %v2765_v48 = vmul.f32 0.7978846, %v2761_v46  ;;  %v2763_v49 = vadd.f32 %v2759_v13, %v2746_v41  ;;  %v3511_v13 = vld [vmem:[%s4854_s29] ss:$0 sm:$0xff] (!%p3509_p6) }
0x1028   : > { %3931 = vtanh.f32 %v2764_v34  ;;  %v2766_v50 = vmul.f32 0.7978846, %v2762_v47 }
0x1029   : > { %3933 = vtanh.f32 %v2765_v48  ;;  %v2767_v51 = vmul.f32 0.7978846, %v2763_v49 }
0x102a   : > { %3935 = vtanh.f32 %v2766_v50 }
0x102b   : > { %3937 = vtanh.f32 %v2767_v51 }
0x1032   : > { %v3932_v52 = vpop.eup %3931 }
0x1033   : > { %v3934_v53 = vpop.eup %3933  ;;  %v2772_v54 = vadd.f32 1.0, %v3932_v52 }
0x1034   : > { %v3936_v55 = vpop.eup %3935  ;;  %v2773_v56 = vadd.f32 1.0, %v3934_v53 }
0x1035   : > { %v3938_v57 = vpop.eup %3937  ;;  %v2776_v29 = vmul.f32 0.5, %v2772_v54  ;;  %v2774_v58 = vadd.f32 1.0, %v3936_v55 }
0x1036   : > { %v2775_v59 = vadd.f32 1.0, %v3938_v57  ;;  %v2777_v60 = vmul.f32 0.5, %v2773_v56 }
0x1037   : > { %v2778_v61 = vmul.f32 0.5, %v2774_v58  ;;  %v2780_v40 = vmul.f32 %v2776_v29, %v2740_v27  ;;  %v3512_v29 = vld [vmem:[%s4855_s11] ss:$0 sm:$0xff] (!%p3509_p6) }
0x1038   : > { %v2779_v62 = vmul.f32 0.5, %v2775_v59  ;;  %v2781_v0 = vmul.f32 %v2777_v60, %v2742_v31 }
0x1039   : > { %v2782_v63 = vmul.f32 %v2778_v61, %v2744_v37 }
0x103a   : > { %v2783_v1 = vmul.f32 %v2779_v62, %v2746_v41  ;;  %v3941_v41 = vld [vmem:[%s4852_s30] sm:$0xff] (!%p3509_p6)  }
0x103b   : > { %v2784_v2 = vpack.c.bf16 %v2782_v63, %v2780_v40 }
0x103c   : > { %v2785_v3 = vpack.c.bf16 %v2783_v1, %v2781_v0 }
0x103e   : > { %2953 = vmatprep.mubr.bf16.mxu0 %v2785_v3 }
0x103f   : > { %2954 = vmatmul.mubr.bf16.vlgmr.msra.gmra.mrb[36].mxu0 %v2784_v2 }
0x1040   : > { %3755 = vmatpush3.bf16.msra.mxu0 (!%p3509_p6), %v3941_v41  ;;  %3762 = vmatprep.mubr.msk.bf16.mxu0 (!%p3509_p6), %vm4043_vm11, %v4042_v6 }
0x1041   : > { %3756 = vmatprep.subr.bf16.mxu0 (!%p3509_p6), %v4042_v6 }
0x1044   : > { %3757 = vmatpush3.bf16.msra.mxu0 (!%p3509_p6), %v3942_v10 }
0x1045   : > { %3758 = vmatprep.subr.bf16.mxu0 (!%p3509_p6), %v4042_v6 }
0x1048   : > { %3759 = vmatpush3.bf16.msra.mxu0 (!%p3509_p6), %v3943_v11 }
0x1049   : > { %3760 = vmatprep.subr.bf16.mxu0 (!%p3509_p6), %v4042_v6 }
0x104c   : > { %3761 = vmatpush3.bf16.msra.mxu0 (!%p3509_p6), %v3944_v42 }
0x1112   : > { %v3599_v4 = vpop.f32.mrb[36].mxu0 }
0x1113   : > { %v3600_v7 = vpop.f32.mrb[37].mxu0 }
0x1114   : > { %v3601_v8 = vadd.f32 %v3600_v7, %v3599_v4  ;;  %v3602_v9 = vpop.f32.mrb[38].mxu0 }
0x1115   : > { %v3603_v15 = vpop.f32.mrb[39].mxu0 }
0x1116   : > { %v2956_v14 = vadd.f32 %v3601_v8, %v3491_v5  ;;  %v3604_v18 = vadd.f32 %v3603_v15, %v3602_v9 }
0x1118   : > { %v2969_v16 = vmul.f32 %v3508_v12, %v2956_v14  ;;  %v2959_v17 = vadd.f32 %v3604_v18, %v3491_v5  ;;  %2978 = sbr.rel (%p3509_p6) target bundleno = 4935 (0x1347), region = 132 }
0x111a   : > { %v2971_v19 = vadd.f32 %v2969_v16, %v4607_v24  ;;  %v2970_v20 = vmul.f32 %v3508_v12, %v2959_v17 }
0x111c   : > { %2973 = vst.msk [vmem:[#allocation2] sm:$0xff] %vm1299_vm1, %v2971_v19  ;;  %v2972_v21 = vadd.f32 %v2970_v20, %v4609_v26 }
0x111e   : > { %2974 = vst.msk [vmem:[#allocation2 + $0x8] sm:$0xff] %vm1299_vm1, %v2972_v21  ;;  %v2983_v23 = vrot.slane (!%p3509_p6), %v2972_v21, 7 }
0x1120   : > { %v2985_v25 = vsel %vm2984_vm9, %v2983_v23, %v2971_v19 }
0x1121   : > { %v2988_v39 = vsel %vm2987_vm10, %v2985_v25, 0.0 }
0x1122   : > { %2989 = vadd.xlane.f32.xlu0 %v2988_v39 }
0x11af   : > { %v2990_v27 = vpop.xlane.xlu0 %2989 }
0x11b0   : > { %v2991_v30 = vmul.f32 0.015625, %v2990_v27 }
0x11b2   : > { %v2993_v24 = vrot.slane %v2991_v30, 1  ;;  %v2996_v31 = vsub.f32 %v2971_v19, %v2991_v30 }
0x11b4   : > { %v2997_v32 = vsub.f32 %v2972_v21, %v2993_v24  ;;  %v2998_v37 = vmul.f32 %v2996_v31, %v2996_v31 }
0x11b6   : > { %v2999_v35 = vmul.f32 %v2997_v32, %v2997_v32 }
0x11b8   : > { %v3002_v26 = vrot.slane %v2999_v35, 7 }
0x11ba   : > { %v3003_v33 = vsel %vm2984_vm9, %v3002_v26, %v2998_v37 }
0x11bb   : > { %v3005_v38 = vsel %vm2987_vm10, %v3003_v33, 0.0 }
0x11bc   : > { %3006 = vadd.xlane.f32.xlu0 %v3005_v38 }
0x1249   : > { %v3007_v36 = vpop.xlane.xlu0 %3006 }
0x124a   : > { %v3008_v43 = vmul.f32 0.015625, %v3007_v36 }
0x124c   : > { %v3009_v44 = vadd.f32 1e-06, %v3008_v43 }
0x124e   : > { %3945 = vrsqrt.f32 %v3009_v44 }
0x1258   : > { %v3946_v45 = vpop.eup %3945 }
0x1259   : > { %v3012_v28 = vrot.slane %v3946_v45, 1  ;;  %v3015_v46 = vmul.f32 %v3946_v45, %v2996_v31 }
0x125b   : > { %v3016_v34 = vmul.f32 %v3012_v28, %v2997_v32  ;;  %v3023_v47 = vmul.f32 %v3510_v22, %v3015_v46 }
0x125d   : > { %v3024_v48 = vmul.f32 %v3510_v22, %v3016_v34  ;;  %v3031_v49 = vadd.f32 %v3511_v13, %v3023_v47 }
0x125f   : > { %v3032_v50 = vadd.f32 %v3511_v13, %v3024_v48  ;;  %v3033_v51 = vpack.c.bf16 %v3031_v49, %v3031_v49 }
0x1261   : > { %v3034_v52 = vpack.c.bf16 %v3032_v50, %v3032_v50  ;;  %v3052_v54 = vunpack.c.l.b16 %v3033_v51 }
0x1263   : > { %v3053_v53 = vunpack.c.l.b16 %v3034_v52 }
0x1265   : > { %v3054_v55 = vrot.slane %v3053_v53, 7 }
0x1267   : > { %v3055_v56 = vsel %vm2984_vm9, %v3054_v55, %v3052_v54 }
0x1268   : > { %v3056_v57 = vpack.c.b16 %v3055_v56, %v3055_v56 }
0x126a   : > { %3763 = vmatmul.mubr.msk.bf16.vlgmr.msra.gmra.mrb[0].mxu0 %vm1299_vm1, %v3056_v57 }
0x133d   : > { %v3118_v58 = vpop.f32.mrb[0].mxu0 }
0x133e   : > { %v3119_v59 = vadd.f32 %v3512_v29, %v3118_v58  ;;  %v3764_v60 = vpop.f32.mrb[1].mxu0 }
0x133f   : > { %v3121_v61 = vpop.f32.mrb[2].mxu0 }
0x1340   : > { %vm3124_vm12 = vcmp.gt.f32.partialorder %v3119_v59, 0.5  ;;  %v3765_v62 = vpop.f32.mrb[3].mxu0 }
0x1341   : > { %v3518_v40 = vsel %vm3124_vm12, 1.0, %v4042_v6 }
0x1342   : > { %3127 = vst [vmem:[#allocation3] sm:$0x3] %v3518_v40  ;;  %v3128_v63 = vsub.f32 %v3518_v40, %v3119_v59 }
0x1344   : > { %v3129_v0 = vmul.f32 %v3128_v63, %v3128_v63 }
0x1346   : > { %3130 = vst [vmem:[#allocation5] sm:$0x3] %v3129_v0 }
0x1347 PF: > { %s4856_s23 = sld [smem:[#allocation10_spill]]  ;;  %s4044_s4 = smov [#allocation3]  }
0x1348   : > { %s3140_s8 = sshll.u32 %s4044_s4, 4  ;;  %s4045_s24 = smov [#allocation5]   ;;  %s3141_s8 = int_to_ptr.vmem [resolvable:$true] %s3140_s8 }
0x1349   : > { %s3153_s10 = sshll.u32 %s4045_s24, 4  ;;  %s3947_s22 = scalar_lea.vmem %s3141_s8, 32  ;;  %s4702_s10 = int_to_ptr.vmem [resolvable:$true] %s3153_s10 }
0x134a   : > { %p3948_p8 = scmp.ne.s32.totalorder %s3141_s8, %s3947_s22  ;;  %p3954_p11 = scmp.lt.s32.totalorder %s3141_s8, %s3141_s8 }
0x134b   : > { %p3955_p12 = scmp.lt.s32.totalorder %s3947_s22, %s3947_s22 }
0x134d   : > { %s4857_s7 = sadd.s32 4294967295, %s4856_s23   ;;  %p3956_p13 = por %p3955_p12, %p3954_p11 }
0x134e   : > { %p4698_p7 = scmp.eq.s32.totalorder %s4857_s7, 1 }
0x1350   : > { %p3949_p9 = pnand %p3948_p8, %p4698_p7 }
0x1352   : > { %p3950_p10 = pneg %p3949_p9 }
0x1354   : > { %p3957_p0 = pnand %p3956_p13, %p3950_p10 }
0x1356   : > { %3960 = shalt.err (!%p3957_p0)
}
0x1357   : > { %s4859_s0 = sld [smem:[#allocation31_spill]] }
0x135d   : > { %s3961_s27 = scalar_lea.hbm %s4859_s0, 32 }
0x135e   : > { %p3962_p1 = scmp.ne.s32.totalorder %s4859_s0, %s3961_s27  ;;  %p3967_p4 = scmp.lt.u32.totalorder %s3961_s27, %s4859_s0 }
0x1360   : > { %p3963_p2 = pnand %p3962_p1, %p4698_p7 }
0x1362   : > { %p3964_p3 = pneg %p3963_p2 }
0x1364   : > { %p3969_p5 = pnand %p3967_p4, %p3964_p3 }
0x1366   : > { %3972 = shalt.err (!%p3969_p5)
}
0x1367   : > { %3767 = dma.vmem_to_hbm [thread:$0]  (%p4698_p7), %s3141_s8, 32, %s4859_s0, [#allocation4]  }
0x1368   : > { %s3973_s23 = scalar_lea.vmem %s4702_s10, 32  ;;  %p3980_p10 = scmp.lt.s32.totalorder %s4702_s10, %s4702_s10 }
0x1369   : > { %p3974_p6 = scmp.ne.s32.totalorder %s4702_s10, %s3973_s23  ;;  %p3981_p11 = scmp.lt.s32.totalorder %s3973_s23, %s3973_s23 }
0x136b   : > { %p3975_p8 = pnand %p3974_p6, %p4698_p7  ;;  %p3982_p12 = por %p3981_p11, %p3980_p10 }
0x136d   : > { %p3976_p9 = pneg %p3975_p8 }
0x136f   : > { %p3983_p13 = pnand %p3982_p12, %p3976_p9 }
0x1371   : > { %3986 = shalt.err (!%p3983_p13)
}
0x1372   : > { %s4860_s24 = sld [smem:[#allocation32_spill]] }
0x1378   : > { %s3987_s22 = scalar_lea.hbm %s4860_s24, 32 }
0x1379   : > { %p3988_p0 = scmp.ne.s32.totalorder %s4860_s24, %s3987_s22  ;;  %p3993_p3 = scmp.lt.u32.totalorder %s3987_s22, %s4860_s24 }
0x137b   : > { %p3989_p1 = pnand %p3988_p0, %p4698_p7 }
0x137d   : > { %p3990_p2 = pneg %p3989_p1 }
0x137f   : > { %p3995_p4 = pnand %p3993_p3, %p3990_p2 }
0x1381   : > { %3998 = shalt.err (!%p3995_p4)
}
0x1382   : > { %3769 = dma.vmem_to_hbm [thread:$0]  (%p4698_p7), %s4702_s10, 32, %s4860_s24, [#allocation6]  }
0x1383   : > { %4012 = dma.done.wait (%p4698_p7), [#allocation4], 32  }
0x1384   : > { %4014 = vsyncadd (%p4698_p7), [#allocation4], 4294967264 }
0x1385   : > { %4016 = dma.done.wait (%p4698_p7), [#allocation6], 32  }
0x1386   : > { %4018 = vsyncadd (%p4698_p7), [#allocation6], 4294967264 }
0x1387 PF: > { %s4861_s29 = sld [smem:[#allocation10_spill]]  ;;  %s4862_s7 = sld [smem:[#allocation9_spill]] }
0x1388   : > { %s4863_s4 = sld [smem:[#allocation11_spill]] }
0x138d   : > { %s40_s8 = sadd.s32 1, %s4861_s29  }
0x138e   : > { %p37_p5 = scmp.ge.s32.totalorder %s40_s8, 4  }
0x1390   :  { %39 = sbr.rel (!%p37_p5) target bundleno = 22 (0x16), region = 223 }
0x1397   :  { %3170 = vsyncpa [#allocation4], 1 }
0x1398   :  { %3172 = vsyncpa [#allocation4 + $0x1], 1 }
0x1399   :  { %3173 = vsyncpa [#allocation6], 1 }

</bundles_post_ra>
